<compile_context>
chip_gen: v7x
topology: tpu7x:2x2x1
jax: 0.10.0
libtpu: 0.0.40
codegen_flags: <defaults>
</compile_context>

<pallas_src>
import functools

import jax
import jax.numpy as jnp
from jax.experimental import pallas as pl
from jax.experimental.pallas import tpu as pltpu


def _ieblock_kernel(x_ref, w1_ref, w3_ref, sc1_ref, sh1_ref, sh2_ref,
                    sc3_ref, sh3_ref, cb3_ref, o_ref, pad_ref, *, neg_slope):
    """One batch sample per grid step.

    x_ref  : (1, Ho, Wo, 4*Cin)  space-to-depth input (channels last)
    w1_ref : (9, 4*Cin, Cout)    conv1 rewritten as 3x3 stride-1 in block
                                 space, with BN2's scale folded into columns
    w3_ref : (9, Cout, Cout)     conv3 (3x3 stride-1)
    sc1/sh1: (1, 4*Cin)          folded BN1 scale / shift (tiled x4)
    sh2    : (1, Cout)           folded BN2 shift (conv1 bias folded in)
    sc3/sh3: (1, Cout)           folded BN3 scale / shift
    cb3    : (1, Cout)           conv3 bias
    o_ref  : (1, Ho, Wo, Cout)
    pad_ref: VMEM (Ho+2, Wo+2, max(4*Cin, Cout)) shared zero-padded halo buf
    """
    Ho, Wo, C1 = x_ref.shape[1], x_ref.shape[2], x_ref.shape[3]
    C2 = o_ref.shape[3]

    def lrelu(v):
        return jnp.where(v >= 0, v, neg_slope * v)

    # ---- BN1 + LeakyReLU (elementwise; valid in space-to-depth layout) ----
    y = lrelu(x_ref[0] * sc1_ref[...] + sh1_ref[...])            # (Ho, Wo, C1)

    # ---- conv1: 4x4 stride-2 pad-1  ==  3x3 stride-1 pad-1 in block space ----
    pad_ref[...] = jnp.zeros(pad_ref.shape, pad_ref.dtype)
    pad_ref[1:Ho + 1, 1:Wo + 1, :C1] = y.astype(pad_ref.dtype)

    acc = jnp.zeros((Ho * Wo, C2), jnp.float32)
    for t in range(9):
        kh, kw = t // 3, t % 3
        patch = pad_ref[kh:kh + Ho, kw:kw + Wo, :C1].reshape(Ho * Wo, C1)
        acc = acc + jnp.dot(patch, w1_ref[t],
                            preferred_element_type=jnp.float32)

    # ---- BN2 + LeakyReLU (scale folded into w1, conv1 bias folded into sh2),
    #      conv2 = Identity, BN3 + LeakyReLU ----
    z = lrelu(acc.reshape(Ho, Wo, C2) + sh2_ref[...])
    z = lrelu(z * sc3_ref[...] + sh3_ref[...])

    # ---- conv3: 3x3 stride-1 pad-1 (reuses the same halo scratch) ----
    pad_ref[...] = jnp.zeros(pad_ref.shape, pad_ref.dtype)
    pad_ref[1:Ho + 1, 1:Wo + 1, :C2] = z.astype(pad_ref.dtype)

    acc2 = jnp.broadcast_to(cb3_ref[...].astype(jnp.float32), (Ho * Wo, C2))
    for t in range(9):
        kh, kw = t // 3, t % 3
        patch = pad_ref[kh:kh + Ho, kw:kw + Wo, :C2].reshape(Ho * Wo, C2)
        acc2 = acc2 + jnp.dot(patch, w3_ref[t],
                              preferred_element_type=jnp.float32)

    o_ref[0] = acc2.reshape(Ho, Wo, C2).astype(o_ref.dtype)


def ieblock_forward(x, params, *, eps=1e-5, neg_slope=0.01):
    """Pallas implementation of IEBlock.forward (default config), NCHW in/out."""
    B, Cin, H, W = x.shape
    assert H % 2 == 0 and W % 2 == 0, "stride-2 conv path assumes even H, W"
    Ho, Wo = H // 2, W // 2
    w1_t, b1_t = params["conv1_w"], params["conv1_b"]   # (Cout, Cin, 4, 4), (Cout,)
    w3_t, b3_t = params["conv3_w"], params["conv3_b"]   # (Cout, Cout, 3, 3), (Cout,)
    Cout = w1_t.shape[0]
    C1 = 4 * Cin

    # ---- wrapper-side layout plumbing: NCHW -> space-to-depth NHWC ----
    x_nhwc = jnp.transpose(x, (0, 2, 3, 1))                       # (B, H, W, Cin)
    x_s2d = x_nhwc.reshape(B, Ho, 2, Wo, 2, Cin)
    x_s2d = jnp.transpose(x_s2d, (0, 1, 3, 2, 4, 5)).reshape(B, Ho, Wo, C1)

    # ---- fold BatchNorm (inference) into per-channel scale / shift ----
    def fold(g, b, m, v):
        s = g * jax.lax.rsqrt(v + eps)
        return s, b - m * s

    sc1, sh1 = fold(params["bn1_g"], params["bn1_b"], params["bn1_m"], params["bn1_v"])
    sc2, sh2 = fold(params["bn2_g"], params["bn2_b"], params["bn2_m"], params["bn2_v"])
    sc3, sh3 = fold(params["bn3_g"], params["bn3_b"], params["bn3_m"], params["bn3_v"])
    # space-to-depth channel order is (di, dj, ci) -> param index = ci, so tile x4.
    sc1 = jnp.tile(sc1, 4)[None, :]
    sh1 = jnp.tile(sh1, 4)[None, :]
    sh2_f = (sh2 + b1_t * sc2)[None, :]      # fold conv1 bias into BN2 shift
    sc3_f, sh3_f = sc3[None, :], sh3[None, :]
    cb3 = b3_t[None, :]

    # ---- rewrite conv1 (4x4, stride 2, pad 1) as a 3x3 stride-1 conv over the
    #      space-to-depth input: W1b[gh,gw,di,dj,ci,co] = W1[co,ci,2gh+di-1,2gw+dj-1]
    w1b = jnp.zeros((3, 3, 2, 2, Cin, Cout), x.dtype)
    for gh in range(3):
        for di in range(2):
            kh = 2 * gh + di - 1
            if not 0 <= kh < 4:
                continue
            for gw in range(3):
                for dj in range(2):
                    kw = 2 * gw + dj - 1
                    if not 0 <= kw < 4:
                        continue
                    w1b = w1b.at[gh, gw, di, dj].set(
                        jnp.transpose(w1_t[:, :, kh, kw], (1, 0)))
    w1k = w1b.reshape(9, C1, Cout)
    # fold BN2's per-output-channel scale into conv1 weight columns
    w1k = w1k * sc2[None, None, :]
    w3k = jnp.transpose(w3_t, (2, 3, 1, 0)).reshape(9, Cout, Cout)

    Cpad = max(C1, Cout)
    kernel = functools.partial(_ieblock_kernel, neg_slope=neg_slope)
    out_nhwc = pl.pallas_call(
        kernel,
        out_shape=jax.ShapeDtypeStruct((B, Ho, Wo, Cout), x.dtype),
        grid=(B,),
        in_specs=[
            pl.BlockSpec((1, Ho, Wo, C1), lambda b: (b, 0, 0, 0)),
            pl.BlockSpec((9, C1, Cout), lambda b: (0, 0, 0)),
            pl.BlockSpec((9, Cout, Cout), lambda b: (0, 0, 0)),
            pl.BlockSpec((1, C1), lambda b: (0, 0)),
            pl.BlockSpec((1, C1), lambda b: (0, 0)),
            pl.BlockSpec((1, Cout), lambda b: (0, 0)),
            pl.BlockSpec((1, Cout), lambda b: (0, 0)),
            pl.BlockSpec((1, Cout), lambda b: (0, 0)),
            pl.BlockSpec((1, Cout), lambda b: (0, 0)),
        ],
        out_specs=pl.BlockSpec((1, Ho, Wo, Cout), lambda b: (b, 0, 0, 0)),
        scratch_shapes=[
            pltpu.VMEM((Ho + 2, Wo + 2, Cpad), jnp.float32),
        ],
        compiler_params=pltpu.CompilerParams(dimension_semantics=("parallel",)),
    )(x_s2d, w1k, w3k, sc1, sh1, sh2_f, sc3_f, sh3_f, cb3)

    return jnp.transpose(out_nhwc, (0, 3, 1, 2))                  # back to NCHW


def _ieblock_ref(x, params, *, eps=1e-5, neg_slope=0.01):
    """Pure-JAX reference mirroring the PyTorch forward (inference-mode BN)."""
    def bn(v, g, b, m, var):
        s = g / jnp.sqrt(var + eps)
        return v * s[None, :, None, None] + (b - m * s)[None, :, None, None]

    def lrelu(v):
        return jnp.where(v >= 0, v, neg_slope * v)

    y = lrelu(bn(x, params["bn1_g"], params["bn1_b"], params["bn1_m"], params["bn1_v"]))
    y = jax.lax.conv_general_dilated(
        y, params["conv1_w"], window_strides=(2, 2), padding=((1, 1), (1, 1)),
        dimension_numbers=("NCHW", "OIHW", "NCHW"))
    y = y + params["conv1_b"][None, :, None, None]
    y = lrelu(bn(y, params["bn2_g"], params["bn2_b"], params["bn2_m"], params["bn2_v"]))
    # conv2 = nn.Identity()
    y = lrelu(bn(y, params["bn3_g"], params["bn3_b"], params["bn3_m"], params["bn3_v"]))
    y = jax.lax.conv_general_dilated(
        y, params["conv3_w"], window_strides=(1, 1), padding=((1, 1), (1, 1)),
        dimension_numbers=("NCHW", "OIHW", "NCHW"))
    y = y + params["conv3_b"][None, :, None, None]
    return y


if __name__ == "__main__":
    key = jax.random.PRNGKey(0)
    B, Cin, Cout, H, W = 2, 4, 8, 16, 16
    ks = jax.random.split(key, 18)

    x = jax.random.normal(ks[0], (B, Cin, H, W), dtype=jnp.float32)
    params = {
        "conv1_w": 0.2 * jax.random.normal(ks[1], (Cout, Cin, 4, 4), jnp.float32),
        "conv1_b": 0.1 * jax.random.normal(ks[2], (Cout,), jnp.float32),
        "conv3_w": 0.2 * jax.random.normal(ks[3], (Cout, Cout, 3, 3), jnp.float32),
        "conv3_b": 0.1 * jax.random.normal(ks[4], (Cout,), jnp.float32),
        "bn1_g": 1.0 + 0.1 * jax.random.normal(ks[5], (Cin,), jnp.float32),
        "bn1_b": 0.1 * jax.random.normal(ks[6], (Cin,), jnp.float32),
        "bn1_m": 0.1 * jax.random.normal(ks[7], (Cin,), jnp.float32),
        "bn1_v": jax.random.uniform(ks[8], (Cin,), jnp.float32, 0.5, 1.5),
        "bn2_g": 1.0 + 0.1 * jax.random.normal(ks[9], (Cout,), jnp.float32),
        "bn2_b": 0.1 * jax.random.normal(ks[10], (Cout,), jnp.float32),
        "bn2_m": 0.1 * jax.random.normal(ks[11], (Cout,), jnp.float32),
        "bn2_v": jax.random.uniform(ks[12], (Cout,), jnp.float32, 0.5, 1.5),
        "bn3_g": 1.0 + 0.1 * jax.random.normal(ks[13], (Cout,), jnp.float32),
        "bn3_b": 0.1 * jax.random.normal(ks[14], (Cout,), jnp.float32),
        "bn3_m": 0.1 * jax.random.normal(ks[15], (Cout,), jnp.float32),
        "bn3_v": jax.random.uniform(ks[16], (Cout,), jnp.float32, 0.5, 1.5),
    }

    out = jax.block_until_ready(ieblock_forward(x, params))
    ref = _ieblock_ref(x, params)

    assert out.shape == (B, Cout, H // 2, W // 2), out.shape
    max_err = float(jnp.max(jnp.abs(out - ref)))
    assert jnp.allclose(out, ref, atol=2e-2, rtol=2e-2), f"mismatch vs reference: {max_err}"

    print("KERNEL_OK")
</pallas_src>

<mosaic_0001>
module attributes {stable_mosaic.version = 11 : i64} {
  func.func @_ieblock_kernel(%arg0: i32, %arg1: memref<1x8x8x16xf32, #tpu.memory_space<vmem>>, %arg2: memref<9x16x8xf32, #tpu.memory_space<vmem>>, %arg3: memref<9x8x8xf32, #tpu.memory_space<vmem>>, %arg4: memref<1x16xf32, #tpu.memory_space<vmem>>, %arg5: memref<1x16xf32, #tpu.memory_space<vmem>>, %arg6: memref<1x8xf32, #tpu.memory_space<vmem>>, %arg7: memref<1x8xf32, #tpu.memory_space<vmem>>, %arg8: memref<1x8xf32, #tpu.memory_space<vmem>>, %arg9: memref<1x8xf32, #tpu.memory_space<vmem>>, %arg10: memref<1x8x8x8xf32, #tpu.memory_space<vmem>>, %arg11: memref<10x10x16xf32, #tpu.memory_space<vmem>>) attributes {dimension_semantics = [#tpu.dimension_semantics<parallel>], iteration_bounds = array<i64: 2>, scalar_prefetch = 0 : i64, scratch_operands = 1 : i64, tpu.core_type = #tpu.core_type<tc>, window_params = [{transform_indices = @transform_0, window_bounds = array<i64: 1, 8, 8, 16>}, {pipeline_mode = #tpu.pipeline_mode<synchronous>, transform_indices = @transform_1, window_bounds = array<i64: 9, 16, 8>}, {pipeline_mode = #tpu.pipeline_mode<synchronous>, transform_indices = @transform_2, window_bounds = array<i64: 9, 8, 8>}, {pipeline_mode = #tpu.pipeline_mode<synchronous>, transform_indices = @transform_3, window_bounds = array<i64: 1, 16>}, {pipeline_mode = #tpu.pipeline_mode<synchronous>, transform_indices = @transform_4, window_bounds = array<i64: 1, 16>}, {pipeline_mode = #tpu.pipeline_mode<synchronous>, transform_indices = @transform_5, window_bounds = array<i64: 1, 8>}, {pipeline_mode = #tpu.pipeline_mode<synchronous>, transform_indices = @transform_6, window_bounds = array<i64: 1, 8>}, {pipeline_mode = #tpu.pipeline_mode<synchronous>, transform_indices = @transform_7, window_bounds = array<i64: 1, 8>}, {pipeline_mode = #tpu.pipeline_mode<synchronous>, transform_indices = @transform_8, window_bounds = array<i64: 1, 8>}, {transform_indices = @transform_9, window_bounds = array<i64: 1, 8, 8, 8>}]} {
    %c0 = arith.constant 0 : index
    %c0_0 = arith.constant 0 : index
    %c0_1 = arith.constant 0 : index
    %c0_2 = arith.constant 0 : index
    %0 = vector.load %arg1[%c0, %c0_0, %c0_1, %c0_2] : memref<1x8x8x16xf32, #tpu.memory_space<vmem>>, vector<1x8x8x16xf32>
    %1 = vector.shape_cast %0 : vector<1x8x8x16xf32> to vector<8x8x16xf32>
    %c0_3 = arith.constant 0 : index
    %c0_4 = arith.constant 0 : index
    %2 = vector.load %arg4[%c0_3, %c0_4] : memref<1x16xf32, #tpu.memory_space<vmem>>, vector<1x16xf32>
    %3 = vector.shape_cast %2 : vector<1x16xf32> to vector<1x1x16xf32>
    %4 = vector.broadcast %3 : vector<1x1x16xf32> to vector<8x8x16xf32>
    %5 = arith.mulf %1, %4 : vector<8x8x16xf32>
    %c0_5 = arith.constant 0 : index
    %c0_6 = arith.constant 0 : index
    %6 = vector.load %arg5[%c0_5, %c0_6] : memref<1x16xf32, #tpu.memory_space<vmem>>, vector<1x16xf32>
    %7 = vector.shape_cast %6 : vector<1x16xf32> to vector<1x1x16xf32>
    %8 = vector.broadcast %7 : vector<1x1x16xf32> to vector<8x8x16xf32>
    %9 = arith.addf %5, %8 : vector<8x8x16xf32>
    %cst = arith.constant 0.000000e+00 : f32
    %10 = vector.broadcast %cst : f32 to vector<8x8x16xf32>
    %11 = arith.cmpf oge, %9, %10 : vector<8x8x16xf32>
    %cst_7 = arith.constant 0.00999999977 : f32
    %12 = vector.broadcast %cst_7 : f32 to vector<8x8x16xf32>
    %13 = arith.mulf %12, %9 : vector<8x8x16xf32>
    %14 = arith.select %11, %9, %13 : vector<8x8x16xi1>, vector<8x8x16xf32>
    %cst_8 = arith.constant 0.000000e+00 : f32
    %15 = vector.broadcast %cst_8 : f32 to vector<10x10x16xf32>
    %c0_9 = arith.constant 0 : index
    %c0_10 = arith.constant 0 : index
    %c0_11 = arith.constant 0 : index
    %16 = vector.load %arg11[%c0_9, %c0_10, %c0_11] : memref<10x10x16xf32, #tpu.memory_space<vmem>>, vector<10x10x16xf32>
    tpu.vector_store %arg11[%c0_9, %c0_10, %c0_11], %15 {strides = array<i32>} : memref<10x10x16xf32, #tpu.memory_space<vmem>>, vector<10x10x16xf32>,
    %c1 = arith.constant 1 : index
    %c1_12 = arith.constant 1 : index
    %c0_13 = arith.constant 0 : index
    %17 = vector.load %arg11[%c1, %c1_12, %c0_13] : memref<10x10x16xf32, #tpu.memory_space<vmem>>, vector<8x8x16xf32>
    tpu.vector_store %arg11[%c1, %c1_12, %c0_13], %14 {strides = array<i32>} : memref<10x10x16xf32, #tpu.memory_space<vmem>>, vector<8x8x16xf32>,
    %cst_14 = arith.constant 0.000000e+00 : f32
    %18 = vector.broadcast %cst_14 : f32 to vector<64x8xf32>
    %c0_15 = arith.constant 0 : index
    %c0_16 = arith.constant 0 : index
    %c0_17 = arith.constant 0 : index
    %19 = vector.load %arg11[%c0_15, %c0_16, %c0_17] : memref<10x10x16xf32, #tpu.memory_space<vmem>>, vector<8x8x16xf32>
    %20 = vector.shape_cast %19 : vector<8x8x16xf32> to vector<64x16xf32>
    %c0_18 = arith.constant 0 : index
    %c0_19 = arith.constant 0 : index
    %c0_20 = arith.constant 0 : index
    %21 = vector.load %arg2[%c0_18, %c0_19, %c0_20] : memref<9x16x8xf32, #tpu.memory_space<vmem>>, vector<1x16x8xf32>
    %22 = vector.shape_cast %21 : vector<1x16x8xf32> to vector<16x8xf32>
    %cst_21 = arith.constant dense<0.000000e+00> : vector<64x8xf32>
    %23 = tpu.matmul %20, %22, %cst_21 {dimension_numbers = #tpu.dot_dimension_numbers<[1], [0], [0], [1], [0, 0, 1, 1], [], []>} : vector<64x16xf32>, vector<16x8xf32>, vector<64x8xf32> -> vector<64x8xf32>
    %24 = arith.addf %18, %23 : vector<64x8xf32>
    %c0_22 = arith.constant 0 : index
    %c1_23 = arith.constant 1 : index
    %c0_24 = arith.constant 0 : index
    %25 = vector.load %arg11[%c0_22, %c1_23, %c0_24] : memref<10x10x16xf32, #tpu.memory_space<vmem>>, vector<8x8x16xf32>
    %26 = vector.shape_cast %25 : vector<8x8x16xf32> to vector<64x16xf32>
    %c1_25 = arith.constant 1 : index
    %c0_26 = arith.constant 0 : index
    %c0_27 = arith.constant 0 : index
    %27 = vector.load %arg2[%c1_25, %c0_26, %c0_27] : memref<9x16x8xf32, #tpu.memory_space<vmem>>, vector<1x16x8xf32>
    %28 = vector.shape_cast %27 : vector<1x16x8xf32> to vector<16x8xf32>
    %cst_28 = arith.constant dense<0.000000e+00> : vector<64x8xf32>
    %29 = tpu.matmul %26, %28, %cst_28 {dimension_numbers = #tpu.dot_dimension_numbers<[1], [0], [0], [1], [0, 0, 1, 1], [], []>} : vector<64x16xf32>, vector<16x8xf32>, vector<64x8xf32> -> vector<64x8xf32>
    %30 = arith.addf %24, %29 : vector<64x8xf32>
    %c0_29 = arith.constant 0 : index
    %c2 = arith.constant 2 : index
    %c0_30 = arith.constant 0 : index
    %31 = vector.load %arg11[%c0_29, %c2, %c0_30] : memref<10x10x16xf32, #tpu.memory_space<vmem>>, vector<8x8x16xf32>
    %32 = vector.shape_cast %31 : vector<8x8x16xf32> to vector<64x16xf32>
    %c2_31 = arith.constant 2 : index
    %c0_32 = arith.constant 0 : index
    %c0_33 = arith.constant 0 : index
    %33 = vector.load %arg2[%c2_31, %c0_32, %c0_33] : memref<9x16x8xf32, #tpu.memory_space<vmem>>, vector<1x16x8xf32>
    %34 = vector.shape_cast %33 : vector<1x16x8xf32> to vector<16x8xf32>
    %cst_34 = arith.constant dense<0.000000e+00> : vector<64x8xf32>
    %35 = tpu.matmul %32, %34, %cst_34 {dimension_numbers = #tpu.dot_dimension_numbers<[1], [0], [0], [1], [0, 0, 1, 1], [], []>} : vector<64x16xf32>, vector<16x8xf32>, vector<64x8xf32> -> vector<64x8xf32>
    %36 = arith.addf %30, %35 : vector<64x8xf32>
    %c1_35 = arith.constant 1 : index
    %c0_36 = arith.constant 0 : index
    %c0_37 = arith.constant 0 : index
    %37 = vector.load %arg11[%c1_35, %c0_36, %c0_37] : memref<10x10x16xf32, #tpu.memory_space<vmem>>, vector<8x8x16xf32>
    %38 = vector.shape_cast %37 : vector<8x8x16xf32> to vector<64x16xf32>
    %c3 = arith.constant 3 : index
    %c0_38 = arith.constant 0 : index
    %c0_39 = arith.constant 0 : index
    %39 = vector.load %arg2[%c3, %c0_38, %c0_39] : memref<9x16x8xf32, #tpu.memory_space<vmem>>, vector<1x16x8xf32>
    %40 = vector.shape_cast %39 : vector<1x16x8xf32> to vector<16x8xf32>
    %cst_40 = arith.constant dense<0.000000e+00> : vector<64x8xf32>
    %41 = tpu.matmul %38, %40, %cst_40 {dimension_numbers = #tpu.dot_dimension_numbers<[1], [0], [0], [1], [0, 0, 1, 1], [], []>} : vector<64x16xf32>, vector<16x8xf32>, vector<64x8xf32> -> vector<64x8xf32>
    %42 = arith.addf %36, %41 : vector<64x8xf32>
    %c1_41 = arith.constant 1 : index
    %c1_42 = arith.constant 1 : index
    %c0_43 = arith.constant 0 : index
    %43 = vector.load %arg11[%c1_41, %c1_42, %c0_43] : memref<10x10x16xf32, #tpu.memory_space<vmem>>, vector<8x8x16xf32>
    %44 = vector.shape_cast %43 : vector<8x8x16xf32> to vector<64x16xf32>
    %c4 = arith.constant 4 : index
    %c0_44 = arith.constant 0 : index
    %c0_45 = arith.constant 0 : index
    %45 = vector.load %arg2[%c4, %c0_44, %c0_45] : memref<9x16x8xf32, #tpu.memory_space<vmem>>, vector<1x16x8xf32>
    %46 = vector.shape_cast %45 : vector<1x16x8xf32> to vector<16x8xf32>
    %cst_46 = arith.constant dense<0.000000e+00> : vector<64x8xf32>
    %47 = tpu.matmul %44, %46, %cst_46 {dimension_numbers = #tpu.dot_dimension_numbers<[1], [0], [0], [1], [0, 0, 1, 1], [], []>} : vector<64x16xf32>, vector<16x8xf32>, vector<64x8xf32> -> vector<64x8xf32>
    %48 = arith.addf %42, %47 : vector<64x8xf32>
    %c1_47 = arith.constant 1 : index
    %c2_48 = arith.constant 2 : index
    %c0_49 = arith.constant 0 : index
    %49 = vector.load %arg11[%c1_47, %c2_48, %c0_49] : memref<10x10x16xf32, #tpu.memory_space<vmem>>, vector<8x8x16xf32>
    %50 = vector.shape_cast %49 : vector<8x8x16xf32> to vector<64x16xf32>
    %c5 = arith.constant 5 : index
    %c0_50 = arith.constant 0 : index
    %c0_51 = arith.constant 0 : index
    %51 = vector.load %arg2[%c5, %c0_50, %c0_51] : memref<9x16x8xf32, #tpu.memory_space<vmem>>, vector<1x16x8xf32>
    %52 = vector.shape_cast %51 : vector<1x16x8xf32> to vector<16x8xf32>
    %cst_52 = arith.constant dense<0.000000e+00> : vector<64x8xf32>
    %53 = tpu.matmul %50, %52, %cst_52 {dimension_numbers = #tpu.dot_dimension_numbers<[1], [0], [0], [1], [0, 0, 1, 1], [], []>} : vector<64x16xf32>, vector<16x8xf32>, vector<64x8xf32> -> vector<64x8xf32>
    %54 = arith.addf %48, %53 : vector<64x8xf32>
    %c2_53 = arith.constant 2 : index
    %c0_54 = arith.constant 0 : index
    %c0_55 = arith.constant 0 : index
    %55 = vector.load %arg11[%c2_53, %c0_54, %c0_55] : memref<10x10x16xf32, #tpu.memory_space<vmem>>, vector<8x8x16xf32>
    %56 = vector.shape_cast %55 : vector<8x8x16xf32> to vector<64x16xf32>
    %c6 = arith.constant 6 : index
    %c0_56 = arith.constant 0 : index
    %c0_57 = arith.constant 0 : index
    %57 = vector.load %arg2[%c6, %c0_56, %c0_57] : memref<9x16x8xf32, #tpu.memory_space<vmem>>, vector<1x16x8xf32>
    %58 = vector.shape_cast %57 : vector<1x16x8xf32> to vector<16x8xf32>
    %cst_58 = arith.constant dense<0.000000e+00> : vector<64x8xf32>
    %59 = tpu.matmul %56, %58, %cst_58 {dimension_numbers = #tpu.dot_dimension_numbers<[1], [0], [0], [1], [0, 0, 1, 1], [], []>} : vector<64x16xf32>, vector<16x8xf32>, vector<64x8xf32> -> vector<64x8xf32>
    %60 = arith.addf %54, %59 : vector<64x8xf32>
    %c2_59 = arith.constant 2 : index
    %c1_60 = arith.constant 1 : index
    %c0_61 = arith.constant 0 : index
    %61 = vector.load %arg11[%c2_59, %c1_60, %c0_61] : memref<10x10x16xf32, #tpu.memory_space<vmem>>, vector<8x8x16xf32>
    %62 = vector.shape_cast %61 : vector<8x8x16xf32> to vector<64x16xf32>
    %c7 = arith.constant 7 : index
    %c0_62 = arith.constant 0 : index
    %c0_63 = arith.constant 0 : index
    %63 = vector.load %arg2[%c7, %c0_62, %c0_63] : memref<9x16x8xf32, #tpu.memory_space<vmem>>, vector<1x16x8xf32>
    %64 = vector.shape_cast %63 : vector<1x16x8xf32> to vector<16x8xf32>
    %cst_64 = arith.constant dense<0.000000e+00> : vector<64x8xf32>
    %65 = tpu.matmul %62, %64, %cst_64 {dimension_numbers = #tpu.dot_dimension_numbers<[1], [0], [0], [1], [0, 0, 1, 1], [], []>} : vector<64x16xf32>, vector<16x8xf32>, vector<64x8xf32> -> vector<64x8xf32>
    %66 = arith.addf %60, %65 : vector<64x8xf32>
    %c2_65 = arith.constant 2 : index
    %c2_66 = arith.constant 2 : index
    %c0_67 = arith.constant 0 : index
    %67 = vector.load %arg11[%c2_65, %c2_66, %c0_67] : memref<10x10x16xf32, #tpu.memory_space<vmem>>, vector<8x8x16xf32>
    %68 = vector.shape_cast %67 : vector<8x8x16xf32> to vector<64x16xf32>
    %c8 = arith.constant 8 : index
    %c0_68 = arith.constant 0 : index
    %c0_69 = arith.constant 0 : index
    %69 = vector.load %arg2[%c8, %c0_68, %c0_69] : memref<9x16x8xf32, #tpu.memory_space<vmem>>, vector<1x16x8xf32>
    %70 = vector.shape_cast %69 : vector<1x16x8xf32> to vector<16x8xf32>
    %cst_70 = arith.constant dense<0.000000e+00> : vector<64x8xf32>
    %71 = tpu.matmul %68, %70, %cst_70 {dimension_numbers = #tpu.dot_dimension_numbers<[1], [0], [0], [1], [0, 0, 1, 1], [], []>} : vector<64x16xf32>, vector<16x8xf32>, vector<64x8xf32> -> vector<64x8xf32>
    %72 = arith.addf %66, %71 : vector<64x8xf32>
    %73 = vector.shape_cast %72 : vector<64x8xf32> to vector<8x8x8xf32>
    %c0_71 = arith.constant 0 : index
    %c0_72 = arith.constant 0 : index
    %74 = vector.load %arg6[%c0_71, %c0_72] : memref<1x8xf32, #tpu.memory_space<vmem>>, vector<1x8xf32>
    %75 = vector.shape_cast %74 : vector<1x8xf32> to vector<1x1x8xf32>
    %76 = vector.broadcast %75 : vector<1x1x8xf32> to vector<8x8x8xf32>
    %77 = arith.addf %73, %76 : vector<8x8x8xf32>
    %cst_73 = arith.constant 0.000000e+00 : f32
    %78 = vector.broadcast %cst_73 : f32 to vector<8x8x8xf32>
    %79 = arith.cmpf oge, %77, %78 : vector<8x8x8xf32>
    %cst_74 = arith.constant 0.00999999977 : f32
    %80 = vector.broadcast %cst_74 : f32 to vector<8x8x8xf32>
    %81 = arith.mulf %80, %77 : vector<8x8x8xf32>
    %82 = arith.select %79, %77, %81 : vector<8x8x8xi1>, vector<8x8x8xf32>
    %c0_75 = arith.constant 0 : index
    %c0_76 = arith.constant 0 : index
    %83 = vector.load %arg7[%c0_75, %c0_76] : memref<1x8xf32, #tpu.memory_space<vmem>>, vector<1x8xf32>
    %84 = vector.shape_cast %83 : vector<1x8xf32> to vector<1x1x8xf32>
    %85 = vector.broadcast %84 : vector<1x1x8xf32> to vector<8x8x8xf32>
    %86 = arith.mulf %82, %85 : vector<8x8x8xf32>
    %c0_77 = arith.constant 0 : index
    %c0_78 = arith.constant 0 : index
    %87 = vector.load %arg8[%c0_77, %c0_78] : memref<1x8xf32, #tpu.memory_space<vmem>>, vector<1x8xf32>
    %88 = vector.shape_cast %87 : vector<1x8xf32> to vector<1x1x8xf32>
    %89 = vector.broadcast %88 : vector<1x1x8xf32> to vector<8x8x8xf32>
    %90 = arith.addf %86, %89 : vector<8x8x8xf32>
    %cst_79 = arith.constant 0.000000e+00 : f32
    %91 = vector.broadcast %cst_79 : f32 to vector<8x8x8xf32>
    %92 = arith.cmpf oge, %90, %91 : vector<8x8x8xf32>
    %cst_80 = arith.constant 0.00999999977 : f32
    %93 = vector.broadcast %cst_80 : f32 to vector<8x8x8xf32>
    %94 = arith.mulf %93, %90 : vector<8x8x8xf32>
    %95 = arith.select %92, %90, %94 : vector<8x8x8xi1>, vector<8x8x8xf32>
    %cst_81 = arith.constant 0.000000e+00 : f32
    %96 = vector.broadcast %cst_81 : f32 to vector<10x10x16xf32>
    %c0_82 = arith.constant 0 : index
    %c0_83 = arith.constant 0 : index
    %c0_84 = arith.constant 0 : index
    %97 = vector.load %arg11[%c0_82, %c0_83, %c0_84] : memref<10x10x16xf32, #tpu.memory_space<vmem>>, vector<10x10x16xf32>
    tpu.vector_store %arg11[%c0_82, %c0_83, %c0_84], %96 {strides = array<i32>} : memref<10x10x16xf32, #tpu.memory_space<vmem>>, vector<10x10x16xf32>,
    %c1_85 = arith.constant 1 : index
    %c1_86 = arith.constant 1 : index
    %c0_87 = arith.constant 0 : index
    %98 = vector.load %arg11[%c1_85, %c1_86, %c0_87] : memref<10x10x16xf32, #tpu.memory_space<vmem>>, vector<8x8x8xf32>
    tpu.vector_store %arg11[%c1_85, %c1_86, %c0_87], %95 {strides = array<i32>} : memref<10x10x16xf32, #tpu.memory_space<vmem>>, vector<8x8x8xf32>,
    %c0_88 = arith.constant 0 : index
    %c0_89 = arith.constant 0 : index
    %99 = vector.load %arg9[%c0_88, %c0_89] : memref<1x8xf32, #tpu.memory_space<vmem>>, vector<1x8xf32>
    %100 = vector.shape_cast %99 : vector<1x8xf32> to vector<1x8xf32>
    %101 = vector.broadcast %100 : vector<1x8xf32> to vector<64x8xf32>
    %c0_90 = arith.constant 0 : index
    %c0_91 = arith.constant 0 : index
    %c0_92 = arith.constant 0 : index
    %102 = vector.load %arg11[%c0_90, %c0_91, %c0_92] : memref<10x10x16xf32, #tpu.memory_space<vmem>>, vector<8x8x8xf32>
    %103 = vector.shape_cast %102 : vector<8x8x8xf32> to vector<64x8xf32>
    %c0_93 = arith.constant 0 : index
    %c0_94 = arith.constant 0 : index
    %c0_95 = arith.constant 0 : index
    %104 = vector.load %arg3[%c0_93, %c0_94, %c0_95] : memref<9x8x8xf32, #tpu.memory_space<vmem>>, vector<1x8x8xf32>
    %105 = vector.shape_cast %104 : vector<1x8x8xf32> to vector<8x8xf32>
    %cst_96 = arith.constant dense<0.000000e+00> : vector<64x8xf32>
    %106 = tpu.matmul %103, %105, %cst_96 {dimension_numbers = #tpu.dot_dimension_numbers<[1], [0], [0], [1], [0, 0, 1, 1], [], []>} : vector<64x8xf32>, vector<8x8xf32>, vector<64x8xf32> -> vector<64x8xf32>
    %107 = arith.addf %101, %106 : vector<64x8xf32>
    %c0_97 = arith.constant 0 : index
    %c1_98 = arith.constant 1 : index
    %c0_99 = arith.constant 0 : index
    %108 = vector.load %arg11[%c0_97, %c1_98, %c0_99] : memref<10x10x16xf32, #tpu.memory_space<vmem>>, vector<8x8x8xf32>
    %109 = vector.shape_cast %108 : vector<8x8x8xf32> to vector<64x8xf32>
    %c1_100 = arith.constant 1 : index
    %c0_101 = arith.constant 0 : index
    %c0_102 = arith.constant 0 : index
    %110 = vector.load %arg3[%c1_100, %c0_101, %c0_102] : memref<9x8x8xf32, #tpu.memory_space<vmem>>, vector<1x8x8xf32>
    %111 = vector.shape_cast %110 : vector<1x8x8xf32> to vector<8x8xf32>
    %cst_103 = arith.constant dense<0.000000e+00> : vector<64x8xf32>
    %112 = tpu.matmul %109, %111, %cst_103 {dimension_numbers = #tpu.dot_dimension_numbers<[1], [0], [0], [1], [0, 0, 1, 1], [], []>} : vector<64x8xf32>, vector<8x8xf32>, vector<64x8xf32> -> vector<64x8xf32>
    %113 = arith.addf %107, %112 : vector<64x8xf32>
    %c0_104 = arith.constant 0 : index
    %c2_105 = arith.constant 2 : index
    %c0_106 = arith.constant 0 : index
    %114 = vector.load %arg11[%c0_104, %c2_105, %c0_106] : memref<10x10x16xf32, #tpu.memory_space<vmem>>, vector<8x8x8xf32>
    %115 = vector.shape_cast %114 : vector<8x8x8xf32> to vector<64x8xf32>
    %c2_107 = arith.constant 2 : index
    %c0_108 = arith.constant 0 : index
    %c0_109 = arith.constant 0 : index
    %116 = vector.load %arg3[%c2_107, %c0_108, %c0_109] : memref<9x8x8xf32, #tpu.memory_space<vmem>>, vector<1x8x8xf32>
    %117 = vector.shape_cast %116 : vector<1x8x8xf32> to vector<8x8xf32>
    %cst_110 = arith.constant dense<0.000000e+00> : vector<64x8xf32>
    %118 = tpu.matmul %115, %117, %cst_110 {dimension_numbers = #tpu.dot_dimension_numbers<[1], [0], [0], [1], [0, 0, 1, 1], [], []>} : vector<64x8xf32>, vector<8x8xf32>, vector<64x8xf32> -> vector<64x8xf32>
    %119 = arith.addf %113, %118 : vector<64x8xf32>
    %c1_111 = arith.constant 1 : index
    %c0_112 = arith.constant 0 : index
    %c0_113 = arith.constant 0 : index
    %120 = vector.load %arg11[%c1_111, %c0_112, %c0_113] : memref<10x10x16xf32, #tpu.memory_space<vmem>>, vector<8x8x8xf32>
    %121 = vector.shape_cast %120 : vector<8x8x8xf32> to vector<64x8xf32>
    %c3_114 = arith.constant 3 : index
    %c0_115 = arith.constant 0 : index
    %c0_116 = arith.constant 0 : index
    %122 = vector.load %arg3[%c3_114, %c0_115, %c0_116] : memref<9x8x8xf32, #tpu.memory_space<vmem>>, vector<1x8x8xf32>
    %123 = vector.shape_cast %122 : vector<1x8x8xf32> to vector<8x8xf32>
    %cst_117 = arith.constant dense<0.000000e+00> : vector<64x8xf32>
    %124 = tpu.matmul %121, %123, %cst_117 {dimension_numbers = #tpu.dot_dimension_numbers<[1], [0], [0], [1], [0, 0, 1, 1], [], []>} : vector<64x8xf32>, vector<8x8xf32>, vector<64x8xf32> -> vector<64x8xf32>
    %125 = arith.addf %119, %124 : vector<64x8xf32>
    %c1_118 = arith.constant 1 : index
    %c1_119 = arith.constant 1 : index
    %c0_120 = arith.constant 0 : index
    %126 = vector.load %arg11[%c1_118, %c1_119, %c0_120] : memref<10x10x16xf32, #tpu.memory_space<vmem>>, vector<8x8x8xf32>
    %127 = vector.shape_cast %126 : vector<8x8x8xf32> to vector<64x8xf32>
    %c4_121 = arith.constant 4 : index
    %c0_122 = arith.constant 0 : index
    %c0_123 = arith.constant 0 : index
    %128 = vector.load %arg3[%c4_121, %c0_122, %c0_123] : memref<9x8x8xf32, #tpu.memory_space<vmem>>, vector<1x8x8xf32>
    %129 = vector.shape_cast %128 : vector<1x8x8xf32> to vector<8x8xf32>
    %cst_124 = arith.constant dense<0.000000e+00> : vector<64x8xf32>
    %130 = tpu.matmul %127, %129, %cst_124 {dimension_numbers = #tpu.dot_dimension_numbers<[1], [0], [0], [1], [0, 0, 1, 1], [], []>} : vector<64x8xf32>, vector<8x8xf32>, vector<64x8xf32> -> vector<64x8xf32>
    %131 = arith.addf %125, %130 : vector<64x8xf32>
    %c1_125 = arith.constant 1 : index
    %c2_126 = arith.constant 2 : index
    %c0_127 = arith.constant 0 : index
    %132 = vector.load %arg11[%c1_125, %c2_126, %c0_127] : memref<10x10x16xf32, #tpu.memory_space<vmem>>, vector<8x8x8xf32>
    %133 = vector.shape_cast %132 : vector<8x8x8xf32> to vector<64x8xf32>
    %c5_128 = arith.constant 5 : index
    %c0_129 = arith.constant 0 : index
    %c0_130 = arith.constant 0 : index
    %134 = vector.load %arg3[%c5_128, %c0_129, %c0_130] : memref<9x8x8xf32, #tpu.memory_space<vmem>>, vector<1x8x8xf32>
    %135 = vector.shape_cast %134 : vector<1x8x8xf32> to vector<8x8xf32>
    %cst_131 = arith.constant dense<0.000000e+00> : vector<64x8xf32>
    %136 = tpu.matmul %133, %135, %cst_131 {dimension_numbers = #tpu.dot_dimension_numbers<[1], [0], [0], [1], [0, 0, 1, 1], [], []>} : vector<64x8xf32>, vector<8x8xf32>, vector<64x8xf32> -> vector<64x8xf32>
    %137 = arith.addf %131, %136 : vector<64x8xf32>
    %c2_132 = arith.constant 2 : index
    %c0_133 = arith.constant 0 : index
    %c0_134 = arith.constant 0 : index
    %138 = vector.load %arg11[%c2_132, %c0_133, %c0_134] : memref<10x10x16xf32, #tpu.memory_space<vmem>>, vector<8x8x8xf32>
    %139 = vector.shape_cast %138 : vector<8x8x8xf32> to vector<64x8xf32>
    %c6_135 = arith.constant 6 : index
    %c0_136 = arith.constant 0 : index
    %c0_137 = arith.constant 0 : index
    %140 = vector.load %arg3[%c6_135, %c0_136, %c0_137] : memref<9x8x8xf32, #tpu.memory_space<vmem>>, vector<1x8x8xf32>
    %141 = vector.shape_cast %140 : vector<1x8x8xf32> to vector<8x8xf32>
    %cst_138 = arith.constant dense<0.000000e+00> : vector<64x8xf32>
    %142 = tpu.matmul %139, %141, %cst_138 {dimension_numbers = #tpu.dot_dimension_numbers<[1], [0], [0], [1], [0, 0, 1, 1], [], []>} : vector<64x8xf32>, vector<8x8xf32>, vector<64x8xf32> -> vector<64x8xf32>
    %143 = arith.addf %137, %142 : vector<64x8xf32>
    %c2_139 = arith.constant 2 : index
    %c1_140 = arith.constant 1 : index
    %c0_141 = arith.constant 0 : index
    %144 = vector.load %arg11[%c2_139, %c1_140, %c0_141] : memref<10x10x16xf32, #tpu.memory_space<vmem>>, vector<8x8x8xf32>
    %145 = vector.shape_cast %144 : vector<8x8x8xf32> to vector<64x8xf32>
    %c7_142 = arith.constant 7 : index
    %c0_143 = arith.constant 0 : index
    %c0_144 = arith.constant 0 : index
    %146 = vector.load %arg3[%c7_142, %c0_143, %c0_144] : memref<9x8x8xf32, #tpu.memory_space<vmem>>, vector<1x8x8xf32>
    %147 = vector.shape_cast %146 : vector<1x8x8xf32> to vector<8x8xf32>
    %cst_145 = arith.constant dense<0.000000e+00> : vector<64x8xf32>
    %148 = tpu.matmul %145, %147, %cst_145 {dimension_numbers = #tpu.dot_dimension_numbers<[1], [0], [0], [1], [0, 0, 1, 1], [], []>} : vector<64x8xf32>, vector<8x8xf32>, vector<64x8xf32> -> vector<64x8xf32>
    %149 = arith.addf %143, %148 : vector<64x8xf32>
    %c2_146 = arith.constant 2 : index
    %c2_147 = arith.constant 2 : index
    %c0_148 = arith.constant 0 : index
    %150 = vector.load %arg11[%c2_146, %c2_147, %c0_148] : memref<10x10x16xf32, #tpu.memory_space<vmem>>, vector<8x8x8xf32>
    %151 = vector.shape_cast %150 : vector<8x8x8xf32> to vector<64x8xf32>
    %c8_149 = arith.constant 8 : index
    %c0_150 = arith.constant 0 : index
    %c0_151 = arith.constant 0 : index
    %152 = vector.load %arg3[%c8_149, %c0_150, %c0_151] : memref<9x8x8xf32, #tpu.memory_space<vmem>>, vector<1x8x8xf32>
    %153 = vector.shape_cast %152 : vector<1x8x8xf32> to vector<8x8xf32>
    %cst_152 = arith.constant dense<0.000000e+00> : vector<64x8xf32>
    %154 = tpu.matmul %151, %153, %cst_152 {dimension_numbers = #tpu.dot_dimension_numbers<[1], [0], [0], [1], [0, 0, 1, 1], [], []>} : vector<64x8xf32>, vector<8x8xf32>, vector<64x8xf32> -> vector<64x8xf32>
    %155 = arith.addf %149, %154 : vector<64x8xf32>
    %156 = vector.shape_cast %155 : vector<64x8xf32> to vector<8x8x8xf32>
    %c0_153 = arith.constant 0 : index
    %c0_154 = arith.constant 0 : index
    %c0_155 = arith.constant 0 : index
    %c0_156 = arith.constant 0 : index
    %157 = vector.load %arg10[%c0_153, %c0_154, %c0_155, %c0_156] : memref<1x8x8x8xf32, #tpu.memory_space<vmem>>, vector<1x8x8x8xf32>
    %158 = vector.shape_cast %157 : vector<1x8x8x8xf32> to vector<8x8x8xf32>
    %159 = vector.shape_cast %156 : vector<8x8x8xf32> to vector<1x8x8x8xf32>
    tpu.vector_store %arg10[%c0_153, %c0_154, %c0_155, %c0_156], %159 {strides = array<i32>} : memref<1x8x8x8xf32, #tpu.memory_space<vmem>>, vector<1x8x8x8xf32>,
    return
  }
  func.func @transform_0(%arg0: i32) -> (i32, i32, i32, i32) {
    %c0_i32 = arith.constant 0 : i32
    %c0_i32_0 = arith.constant 0 : i32
    %c0_i32_1 = arith.constant 0 : i32
    %c0_i32_2 = arith.constant 0 : i32
    return %arg0, %c0_i32, %c0_i32_0, %c0_i32_1 : i32, i32, i32, i32
  }
  func.func @transform_1(%arg0: i32) -> (i32, i32, i32) {
    %c0_i32 = arith.constant 0 : i32
    %c0_i32_0 = arith.constant 0 : i32
    %c0_i32_1 = arith.constant 0 : i32
    %c0_i32_2 = arith.constant 0 : i32
    return %c0_i32, %c0_i32_0, %c0_i32_1 : i32, i32, i32
  }
  func.func @transform_2(%arg0: i32) -> (i32, i32, i32) {
    %c0_i32 = arith.constant 0 : i32
    %c0_i32_0 = arith.constant 0 : i32
    %c0_i32_1 = arith.constant 0 : i32
    %c0_i32_2 = arith.constant 0 : i32
    return %c0_i32, %c0_i32_0, %c0_i32_1 : i32, i32, i32
  }
  func.func @transform_3(%arg0: i32) -> (i32, i32) {
    %c0_i32 = arith.constant 0 : i32
    %c0_i32_0 = arith.constant 0 : i32
    %c0_i32_1 = arith.constant 0 : i32
    return %c0_i32, %c0_i32_0 : i32, i32
  }
  func.func @transform_4(%arg0: i32) -> (i32, i32) {
    %c0_i32 = arith.constant 0 : i32
    %c0_i32_0 = arith.constant 0 : i32
    %c0_i32_1 = arith.constant 0 : i32
    return %c0_i32, %c0_i32_0 : i32, i32
  }
  func.func @transform_5(%arg0: i32) -> (i32, i32) {
    %c0_i32 = arith.constant 0 : i32
    %c0_i32_0 = arith.constant 0 : i32
    %c0_i32_1 = arith.constant 0 : i32
    return %c0_i32, %c0_i32_0 : i32, i32
  }
  func.func @transform_6(%arg0: i32) -> (i32, i32) {
    %c0_i32 = arith.constant 0 : i32
    %c0_i32_0 = arith.constant 0 : i32
    %c0_i32_1 = arith.constant 0 : i32
    return %c0_i32, %c0_i32_0 : i32, i32
  }
  func.func @transform_7(%arg0: i32) -> (i32, i32) {
    %c0_i32 = arith.constant 0 : i32
    %c0_i32_0 = arith.constant 0 : i32
    %c0_i32_1 = arith.constant 0 : i32
    return %c0_i32, %c0_i32_0 : i32, i32
  }
  func.func @transform_8(%arg0: i32) -> (i32, i32) {
    %c0_i32 = arith.constant 0 : i32
    %c0_i32_0 = arith.constant 0 : i32
    %c0_i32_1 = arith.constant 0 : i32
    return %c0_i32, %c0_i32_0 : i32, i32
  }
  func.func @transform_9(%arg0: i32) -> (i32, i32, i32, i32) {
    %c0_i32 = arith.constant 0 : i32
    %c0_i32_0 = arith.constant 0 : i32
    %c0_i32_1 = arith.constant 0 : i32
    %c0_i32_2 = arith.constant 0 : i32
    return %arg0, %c0_i32, %c0_i32_0, %c0_i32_1 : i32, i32, i32, i32
  }
}

</mosaic_0001>

<bundles_post_ra>
// kernel: tpu_custom_call.1
= control target key start
LH: loop header
LB: loop body
LE: loop exit
PB: predicated region body
PF: predicated region fallthrough
CT: control target
= control target key end

     0   :  { %14 = vsyncpa [#allocation4], 0  ;;  %s4941_s0 = inlined_call_operand.vmem [shape: f32[2,8,8,16], index: 0, kind: input, shape index: {}]   ;;  %s4942_s1 = inlined_call_operand.vmem [shape: f32[9,16,8], index: 1, kind: input, shape index: {}]   ;;  %s4943_s2 = inlined_call_operand.vmem [shape: f32[9,8,8], index: 2, kind: input, shape index: {}]   ;;  %s4944_s3 = inlined_call_operand.vmem [shape: f32[1,16], index: 3, kind: input, shape index: {}]   ;;  %s4945_s4 = inlined_call_operand.vmem [shape: f32[1,16], index: 4, kind: input, shape index: {}]   ;;  %s4946_s5 = inlined_call_operand.vmem [shape: f32[1,8], index: 5, kind: input, shape index: {}]   ;;  %s4947_s6 = inlined_call_operand.vmem [shape: f32[1,8], index: 6, kind: input, shape index: {}]   ;;  %s4948_s7 = inlined_call_operand.vmem [shape: f32[1,8], index: 7, kind: input, shape index: {}]   ;;  %s4949_s8 = inlined_call_operand.vmem [shape: f32[1,8], index: 8, kind: input, shape index: {}]   ;;  %s4950_s9 = inlined_call_operand.hbm [shape: f32[2,8,8,8], index: 9, kind: output, shape index: {}]  }
   0x1   :  { %16 = vsyncpa [#allocation4 + $0x1], 0  ;;  %s4236_s30 = smov 0   ;;  %s4238_s10 = smov 0  }
   0x2   :  { %s4240_s11 = smov 0   ;;  %s4242_s12 = smov 0  }
   0x3 LB: > { %s4257_s13 = sadd.s32 4294967295, %s4180_s12   ;;  %s3275_s14 = sadd.s32 4294967294, %s4180_s12   ;;  %s4180_s12 = sphi %s4242_s12, %s4956_s12   ;;  %s4176_s11 = sphi %s4240_s11, %s4955_s11   ;;  %s4172_s10 = sphi %s4238_s10, %s4954_s10   ;;  %s4168_s30 = sphi %s4236_s30, %s4953_s30  }
   0x4   : > { %s4261_s15 = sadd.s32 1, %s4180_s12   ;;  %s223_s16 = sadd.s32 1, %s4176_s11 }
   0x5   : > { %s220_s17 = ssub.s32 %s4180_s12, %s4261_s15  ;;  %p233_p0 = scmp.ne.s32.totalorder %s4176_s11, %s4172_s10 }
   0x6   : > { %p221_p1 = scmp.eq.s32.totalorder %s220_s17, 0  ;;  %p234_p2 = scmp.eq.s32.totalorder %s4257_s13, 1 }
   0x7   : > { %p239_p3 = scmp.ne.s32.totalorder %s4172_s10, %s4168_s30  ;;  %p240_p4 = scmp.eq.s32.totalorder %s3275_s14, 1 }
   0x8   : > { %s4272_s18 = scalar_select %p221_p1, %s4176_s11, %s223_s16  }
   0x9   : > { %p4274_p5 = por %p234_p2, %p233_p0  ;;  %p4278_p6 = por %p240_p4, %p239_p3 }
   0xa   : > { %p3278_p7 = scmp.ge.s32.totalorder %s4180_s12, 1  ;;  %p290_p8 = scmp.lt.s32.totalorder %s4180_s12, 3 }
   0xc   : > { %p291_p9 = pnand %p3278_p7, %p290_p8 }
   0xd   : > { %v3284_v0 = vld [vmem:[%s4942_s1 + $0x10] sm:$0xff] (!%p291_p9)  ;;  %v3285_v1 = vld [vmem:[%s4942_s1 + $0x18] sm:$0xff] (!%p291_p9)  ;;  %vm393_vm0 = vcmask (!%p291_p9), 130048   ;;  %vm395_vm1 = vcmask (!%p291_p9), 123904   ;;  %v432_v2 = vld [vmem:[%s4942_s1] sm:$0xff] (!%p291_p9)  ;;  %v4182_v4 = vmov (!%p291_p9), 0.0  }
   0xe   : > { %294 = sbr.rel (%p291_p9) target bundleno = 775 (0x307), region = 56  ;;  %v3904_v3 = vpack.c.bf16 (!%p291_p9), %v3285_v1, %v3284_v0  ;;  %394 = vst.msk [vmem:[#allocation2] sm:$0xff] (!%p291_p9), %vm393_vm0, %v4182_v4  ;;  %397 = vst.msk [vmem:[#allocation2 + $0x10] sm:$0xff] (!%p291_p9), %vm393_vm0, %v4182_v4  ;;  %v433_v5 = vld [vmem:[%s4942_s1 + $0x8] sm:$0xff] (!%p291_p9)  ;;  %p326_p10 = scmp.lt.s32.totalorder (!%p291_p9), %s4257_s13, 1  ;;  %v3302_v48 = vld [vmem:[%s4942_s1 + $0x20] sm:$0xff] (!%p291_p9) }
   0xf   : > { %396 = vst.msk [vmem:[#allocation2 + $0x8] sm:$0x3] (!%p291_p9), %vm395_vm1, %v4182_v4  ;;  %398 = vst.msk [vmem:[#allocation2 + $0x18] sm:$0x3] (!%p291_p9), %vm395_vm1, %v4182_v4  ;;  %v4337_v6 = vpack.c.bf16 (!%p291_p9), %v433_v5, %v432_v2  ;;  %v3282_v7 = vld [vmem:[%s4944_s3] ss:$0 sm:$0xff] (!%p291_p9) }
  0x10   : > { %399 = vst.msk [vmem:[#allocation2 + $0x20] sm:$0xff] (!%p291_p9), %vm393_vm0, %v4182_v4  ;;  %401 = vst.msk [vmem:[#allocation2 + $0x30] sm:$0xff] (!%p291_p9), %vm393_vm0, %v4182_v4  ;;  %3905 = vmatprep.subr.bf16.mxu0 (!%p291_p9), %v3904_v3  ;;  %v3283_v8 = vld [vmem:[%s4945_s4] ss:$0 sm:$0xff] (!%p291_p9)  ;;  %v3303_v49 = vld [vmem:[%s4942_s1 + $0x28] sm:$0xff] (!%p291_p9)  ;;  %vm1853_vm10 = vcmask (!%p291_p9), 64512  }
  0x11   : > { %400 = vst.msk [vmem:[#allocation2 + $0x28] sm:$0x3] (!%p291_p9), %vm395_vm1, %v4182_v4  ;;  %402 = vst.msk [vmem:[#allocation2 + $0x38] sm:$0x3] (!%p291_p9), %vm395_vm1, %v4182_v4  ;;  %3907 = vmatpush3.bf16.msra.mxu0 (!%p291_p9), %v3904_v3  ;;  %v3912_v54 = vpack.c.bf16 (!%p291_p9), %v3303_v49, %v3302_v48  ;;  %v4663_v49 = vld [vmem:[%s4948_s7] ss:$0 sm:$0xff] (!%p291_p9) }
  0x12   : > { %403 = vst.msk [vmem:[#allocation2 + $0x40] sm:$0xff] (!%p291_p9), %vm393_vm0, %v4182_v4  ;;  %405 = vst.msk [vmem:[#allocation2 + $0x50] sm:$0xff] (!%p291_p9), %vm393_vm0, %v4182_v4  ;;  %3909 = vmatprep.subr.bf16.mxu0 (!%p291_p9), %v4337_v6 }
  0x13   : > { %404 = vst.msk [vmem:[#allocation2 + $0x48] sm:$0x3] (!%p291_p9), %vm395_vm1, %v4182_v4  ;;  %406 = vst.msk [vmem:[#allocation2 + $0x58] sm:$0x3] (!%p291_p9), %vm395_vm1, %v4182_v4 }
  0x14   : > { %407 = vst.msk [vmem:[#allocation2 + $0x60] sm:$0xff] (!%p291_p9), %vm393_vm0, %v4182_v4  ;;  %409 = vst.msk [vmem:[#allocation2 + $0x70] sm:$0xff] (!%p291_p9), %vm393_vm0, %v4182_v4 }
  0x15   : > { %408 = vst.msk [vmem:[#allocation2 + $0x68] sm:$0x3] %vm395_vm1, %v4182_v4  ;;  %410 = vst.msk [vmem:[#allocation2 + $0x78] sm:$0x3] %vm395_vm1, %v4182_v4  ;;  %s327_s29 = scalar_select %p326_p10, %s4257_s13, 1  ;;  %v4351_v26 = vld [vmem:[#allocation2] sm:$0xff] }
  0x16   : > { %411 = vst.msk [vmem:[#allocation2 + $0x80] sm:$0xff] %vm393_vm0, %v4182_v4  ;;  %413 = vst.msk [vmem:[#allocation2 + $0x90] sm:$0xff] %vm393_vm0, %v4182_v4  ;;  %v434_v12 = vld [vmem:[#allocation2 + $0x1] sm:$0xff] }
  0x17   : > { %412 = vst.msk [vmem:[#allocation2 + $0x88] sm:$0x3] %vm395_vm1, %v4182_v4  ;;  %414 = vst.msk [vmem:[#allocation2 + $0x98] sm:$0x3] %vm395_vm1, %v4182_v4  ;;  %s3461_s14 = sshll.u32 %s327_s29, 6  ;;  %3638 = vmatprep.mubr.msk.f32.mxu0 %vm393_vm0, %v434_v12  ;;  %v4353_v27 = vld [vmem:[#allocation2 + $0x2] sm:$0xff] }
  0x18   : > { %s330_s23 = scalar_lea.vmem %s4941_s0, %s3461_s14  ;;  %1833 = vst.msk [vmem:[#allocation2] sm:$0xff] %vm393_vm0, %v4182_v4  ;;  %s323_s14 = sand.u32 1, %s4172_s10  }
  0x19   : > { %v331_v9 = vld [vmem:[%s330_s23] sm:$0xff]  ;;  %v332_v10 = vld [vmem:[%s330_s23 + $0x8] sm:$0xff]  ;;  %v333_v11 = vld [vmem:[%s330_s23 + $0x10] sm:$0xff]  ;;  %1834 = vst.msk [vmem:[#allocation2 + $0x8] sm:$0x3] %vm395_vm1, %v4182_v4  ;;  %s3279_s16 = sshll.u32 %s323_s14, 6 }
  0x1a   : > { %v346_v13 = vmul.f32 %v3282_v7, %v331_v9  ;;  %v347_v14 = vmul.f32 %v3282_v7, %v332_v10  ;;  %v348_v15 = vmul.f32 %v3282_v7, %v333_v11  ;;  %v334_v16 = vld [vmem:[%s330_s23 + $0x18] sm:$0xff]  ;;  %v335_v17 = vld [vmem:[%s330_s23 + $0x20] sm:$0xff]  ;;  %v336_v20 = vld [vmem:[%s330_s23 + $0x28] sm:$0xff]  ;;  %s325_s22 = scalar_lea.vmem [#allocation3], %s3279_s16  ;;  %s4183_s29 = smov [#allocation3]  }
  0x1b   : > { %v349_v18 = vmul.f32 %v3282_v7, %v334_v16  ;;  %v350_v19 = vmul.f32 %v3282_v7, %v335_v17  ;;  %v337_v21 = vld [vmem:[%s330_s23 + $0x30] sm:$0xff]  ;;  %v351_v25 = vmul.f32 %v3282_v7, %v336_v20  ;;  %v338_v28 = vld [vmem:[%s330_s23 + $0x38] sm:$0xff]  ;;  %s3462_s23 = sshll.u32 %s4257_s13, 10  ;;  %s3213_s24 = sshll.u32 %s325_s22, 4  ;;  %s4894_s24 = int_to_ptr.vmem [resolvable:$true] %s3213_s24 }
  0x1c   : > { %v361_v22 = vadd.f32 %v3283_v8, %v346_v13  ;;  %v362_v23 = vadd.f32 %v3283_v8, %v347_v14  ;;  %v363_v24 = vadd.f32 %v3283_v8, %v348_v15  ;;  %v352_v31 = vmul.f32 %v3282_v7, %v337_v21  ;;  %v3313_v20 = vld [vmem:[%s4942_s1 + $0x38] sm:$0xff]  ;;  %s4892_s27 = scalar_lea.hbm %s4950_s9, %s3462_s23  ;;  %s4900_s13 = scalar_lea.sflag [#allocation4], %s323_s14 }
  0x1d   : > { %v364_v29 = vadd.f32 %v3283_v8, %v349_v18  ;;  %v365_v30 = vadd.f32 %v3283_v8, %v350_v19  ;;  %v353_v32 = vmul.f32 %v3282_v7, %v338_v28  ;;  %v366_v42 = vadd.f32 %v3283_v8, %v351_v25  ;;  %v4466_v16 = vld [vmem:[#allocation2 + $0x90] sm:$0xff]  ;;  %v3333_v25 = vld [vmem:[%s4942_s1 + $0x58] sm:$0xff]  ;;  %v3343_v28 = vld [vmem:[%s4942_s1 + $0x68] sm:$0xff]  ;;  %s4118_s28 = scalar_lea.vmem %s4894_s24, 1024  ;;  %s4122_s16 = sshll.u32 %s4183_s29, 4  ;;  %s4123_s16 = int_to_ptr.vmem [resolvable:$false] %s4122_s16 }
  0x1e   : > { %vm369_vm2 = vcmp.ge.f32.partialorder %v361_v22, 0.0  ;;  %v377_v33 = vmul.f32 0.01, %v361_v22  ;;  %vm370_vm3 = vcmp.ge.f32.partialorder %v362_v23, 0.0  ;;  %v378_v34 = vmul.f32 0.01, %v362_v23  ;;  %p4119_p11 = scmp.ne.s32.totalorder %s4894_s24, %s4118_s28  ;;  %p4125_p0 = scmp.lt.s32.totalorder %s4894_s24, %s4123_s16 }
  0x1f   : > { %vm371_vm4 = vcmp.ge.f32.partialorder %v363_v24, 0.0  ;;  %v379_v35 = vmul.f32 0.01, %v363_v24  ;;  %vm372_vm5 = vcmp.ge.f32.partialorder %v364_v29, 0.0  ;;  %v380_v36 = vmul.f32 0.01, %v364_v29 }
  0x20   : > { %v385_v37 = vsel %vm369_vm2, %v361_v22, %v377_v33  ;;  %v386_v38 = vsel %vm370_vm3, %v362_v23, %v378_v34  ;;  %vm373_vm6 = vcmp.ge.f32.partialorder %v365_v30, 0.0  ;;  %v381_v39 = vmul.f32 0.01, %v365_v30  ;;  %v4468_v17 = vld [vmem:[#allocation2 + $0x91] sm:$0xff]  ;;  %v3323_v22 = vld [vmem:[%s4942_s1 + $0x48] sm:$0xff]  ;;  %v3362_v33 = vld [vmem:[%s4942_s1 + $0x80] sm:$0xff]  ;;  %p4120_p12 = pnand %p4119_p11, %p4274_p5 }
  0x21   : > { %416 = vst.msk [vmem:[#allocation2 + $0x11] sm:$0xff] %vm393_vm0, %v385_v37  ;;  %417 = vst.msk [vmem:[#allocation2 + $0x21] sm:$0xff] %vm393_vm0, %v386_v38  ;;  %v387_v40 = vsel %vm371_vm4, %v363_v24, %v379_v35  ;;  %v388_v41 = vsel %vm372_vm5, %v364_v29, %v380_v36  ;;  %v367_v43 = vadd.f32 %v3283_v8, %v352_v31  ;;  %vm374_vm7 = vcmp.ge.f32.partialorder %v366_v42, 0.0  ;;  %v4470_v18 = vld [vmem:[#allocation2 + $0x92] sm:$0xff]  ;;  %v3363_v34 = vld [vmem:[%s4942_s1 + $0x88] sm:$0xff]  ;;  %s4124_s17 = scalar_lea.vmem %s4123_s16, 2048 }
  0x22   : > { %418 = vst.msk [vmem:[#allocation2 + $0x31] sm:$0xff] %vm393_vm0, %v387_v40  ;;  %419 = vst.msk [vmem:[#allocation2 + $0x41] sm:$0xff] %vm393_vm0, %v388_v41  ;;  %v389_v44 = vsel %vm373_vm6, %v365_v30, %v381_v39  ;;  %v368_v45 = vadd.f32 %v3283_v8, %v353_v32  ;;  %v382_v46 = vmul.f32 0.01, %v366_v42  ;;  %v3312_v19 = vld [vmem:[%s4942_s1 + $0x30] sm:$0xff]  ;;  %v3353_v31 = vld [vmem:[%s4942_s1 + $0x78] sm:$0xff]  ;;  %v3936_v35 = vpack.c.bf16 %v3363_v34, %v3362_v33  ;;  %p4121_p13 = pneg %p4120_p12  ;;  %p4126_p1 = scmp.lt.s32.totalorder %s4124_s17, %s4118_s28 }
  0x23   : > { %420 = vst.msk [vmem:[#allocation2 + $0x51] sm:$0xff] %vm393_vm0, %v389_v44  ;;  %vm375_vm8 = vcmp.ge.f32.partialorder %v367_v43, 0.0  ;;  %v383_v47 = vmul.f32 0.01, %v367_v43  ;;  %1851 = vst.msk [vmem:[#allocation2 + $0x90] sm:$0xff] %vm393_vm0, %v4182_v4  ;;  %v3916_v21 = vpack.c.bf16 %v3313_v20, %v3312_v19  ;;  %v3332_v24 = vld [vmem:[%s4942_s1 + $0x50] sm:$0xff] }
  0x24   : > { %vm376_vm9 = vcmp.ge.f32.partialorder %v368_v45, 0.0  ;;  %v384_v50 = vmul.f32 0.01, %v368_v45  ;;  %v390_v51 = vsel %vm374_vm7, %v366_v42, %v382_v46  ;;  %1852 = vst.msk [vmem:[#allocation2 + $0x98] sm:$0x3] %vm395_vm1, %v4182_v4  ;;  %v3352_v30 = vld [vmem:[%s4942_s1 + $0x70] sm:$0xff]  ;;  %p4127_p2 = por %p4126_p1, %p4125_p0 }
  0x25   : > { %v391_v52 = vsel %vm375_vm8, %v367_v43, %v383_v47  ;;  %421 = vst.msk [vmem:[#allocation2 + $0x61] sm:$0xff] %vm393_vm0, %v390_v51  ;;  %v3932_v32 = vpack.c.bf16 %v3353_v31, %v3352_v30  ;;  %v1877_v36 = vld [vmem:[%s4943_s2] sm:$0xff]  ;;  %v4649_v38 = vld [vmem:[%s4943_s2 + $0x8] sm:$0xff] }
  0x26   : > { %422 = vst.msk [vmem:[#allocation2 + $0x71] sm:$0xff] %vm393_vm0, %v391_v52  ;;  %v392_v53 = vsel %vm376_vm9, %v368_v45, %v384_v50  ;;  %3778 = vmatprep.subr.mxu1 %v1877_v36  ;;  %v1869_v37 = vld [vmem:[#allocation2] sm:$0xff]  ;;  %p4128_p3 = pnand %p4127_p2, %p4121_p13 }
  0x27   : > { %423 = vst.msk [vmem:[#allocation2 + $0x81] sm:$0xff] %vm393_vm0, %v392_v53  ;;  %3779 = vmatpush3.msra.mxu1 %v1877_v36  ;;  %3780 = vmatprep.mubr.msk.f32.mxu1 %vm1853_vm10, %v1869_v37  ;;  %v3372_v39 = vld [vmem:[%s4946_s5] ss:$0 sm:$0xff]  ;;  %v3393_v36 = vld [vmem:[%s4943_s2 + $0x10] sm:$0xff] }
  0x28   : > { %v4373_v55 = vld [vmem:[#allocation2 + $0x11] sm:$0xff]  ;;  %v4375_v56 = vld [vmem:[#allocation2 + $0x21] sm:$0xff]  ;;  %3792 = vmatprep.subr.mxu1 %v4649_v38  ;;  %v4658_v45 = vld [vmem:[%s4947_s6] ss:$0 sm:$0xff] }
  0x29   : > { %3639 = vmatmul.mubr.msk.f32.vlgmr.msra.gmra.mrb[0].mxu0 %vm393_vm0, %v4373_v55  ;;  %v4379_v57 = vld [vmem:[#allocation2 + $0x31] sm:$0xff]  ;;  %v4381_v58 = vld [vmem:[#allocation2 + $0x41] sm:$0xff] }
  0x2a   : > { %v4383_v59 = vld [vmem:[#allocation2 + $0x10] sm:$0xff]  ;;  %v4385_v60 = vld [vmem:[#allocation2 + $0x20] sm:$0xff]  ;;  %3911 = vmatpush3.bf16.msra.mxu0 %v4337_v6  ;;  %3641 = vmatprep.mubr.msk.f32.mxu0 %vm393_vm0, %v4375_v56 }
  0x2b   : > { %v4390_v61 = vld [vmem:[#allocation2 + $0x51] sm:$0xff]  ;;  %v4394_v63 = vld [vmem:[#allocation2 + $0x40] sm:$0xff]  ;;  %3913 = vmatprep.subr.bf16.mxu0 %v3912_v54 }
  0x2c   : > { %v4392_v62 = vld [vmem:[#allocation2 + $0x30] sm:$0xff]  ;;  %v4400_v2 = vld [vmem:[#allocation2 + $0x22] sm:$0xff] }
  0x2d   : > { %v4396_v0 = vld [vmem:[#allocation2 + $0x50] sm:$0xff]  ;;  %v4404_v5 = vld [vmem:[#allocation2 + $0x42] sm:$0xff]  ;;  %1838 = vst.msk [vmem:[#allocation2 + $0x28] sm:$0x3] %vm395_vm1, %v4182_v4  ;;  %3642 = vmatmul.mubr.msk.f32.gmra.mrb[2].mxu0 %vm393_vm0, %v4379_v57 }
  0x2e   : > { %v4398_v1 = vld [vmem:[#allocation2 + $0x12] sm:$0xff]  ;;  %1837 = vst.msk [vmem:[#allocation2 + $0x20] sm:$0xff] %vm393_vm0, %v4182_v4  ;;  %v4418_v7 = vld [vmem:[#allocation2 + $0x61] sm:$0xff]  ;;  %1841 = vst.msk [vmem:[#allocation2 + $0x40] sm:$0xff] %vm393_vm0, %v4182_v4  ;;  %3644 = vmatprep.mubr.msk.f32.mxu0 %vm393_vm0, %v4381_v58 }
  0x2f   : > { %v4402_v3 = vld [vmem:[#allocation2 + $0x32] sm:$0xff]  ;;  %1835 = vst.msk [vmem:[#allocation2 + $0x10] sm:$0xff] %vm393_vm0, %v4182_v4  ;;  %v4422_v9 = vld [vmem:[#allocation2 + $0x60] sm:$0xff] }
  0x30   : > { %v4406_v6 = vld [vmem:[#allocation2 + $0x52] sm:$0xff]  ;;  %1836 = vst.msk [vmem:[#allocation2 + $0x18] sm:$0x3] %vm395_vm1, %v4182_v4  ;;  %1840 = vst.msk [vmem:[#allocation2 + $0x38] sm:$0x3] %vm395_vm1, %v4182_v4  ;;  %v4440_v11 = vld [vmem:[#allocation2 + $0x62] sm:$0xff] }
  0x31   : > { %v4420_v8 = vld [vmem:[#allocation2 + $0x71] sm:$0xff]  ;;  %1839 = vst.msk [vmem:[#allocation2 + $0x30] sm:$0xff] %vm393_vm0, %v4182_v4  ;;  %1843 = vst.msk [vmem:[#allocation2 + $0x50] sm:$0xff] %vm393_vm0, %v4182_v4  ;;  %v4444_v13 = vld [vmem:[#allocation2 + $0x80] sm:$0xff]  ;;  %3645 = vmatmul.mubr.msk.f32.gmra.mrb[4].mxu0 %vm393_vm0, %v4390_v61 }
  0x32   : > { %1842 = vst.msk [vmem:[#allocation2 + $0x48] sm:$0x3] %vm395_vm1, %v4182_v4  ;;  %1844 = vst.msk [vmem:[#allocation2 + $0x58] sm:$0x3] %vm395_vm1, %v4182_v4  ;;  %v4438_v10 = vld [vmem:[#allocation2 + $0x70] sm:$0xff]  ;;  %v4446_v14 = vld [vmem:[#allocation2 + $0x81] sm:$0xff]  ;;  %3647 = vmatprep.mubr.msk.f32.mxu0 %vm393_vm0, %v4418_v7 }
  0x33   : > { %v4442_v12 = vld [vmem:[#allocation2 + $0x72] sm:$0xff]  ;;  %v4448_v15 = vld [vmem:[#allocation2 + $0x82] sm:$0xff]  ;;  %1846 = vst.msk [vmem:[#allocation2 + $0x68] sm:$0x3] %vm395_vm1, %v4182_v4 }
  0x34   : > { %1845 = vst.msk [vmem:[#allocation2 + $0x60] sm:$0xff] %vm393_vm0, %v4182_v4  ;;  %1847 = vst.msk [vmem:[#allocation2 + $0x70] sm:$0xff] %vm393_vm0, %v4182_v4 }
  0x35   : > { %1848 = vst.msk [vmem:[#allocation2 + $0x78] sm:$0x3] %vm395_vm1, %v4182_v4  ;;  %1850 = vst.msk [vmem:[#allocation2 + $0x88] sm:$0x3] %vm395_vm1, %v4182_v4  ;;  %3648 = vmatmul.mubr.msk.f32.gmra.mrb[6].mxu0 %vm393_vm0, %v4420_v8 }
  0x36   : > { %1849 = vst.msk [vmem:[#allocation2 + $0x80] sm:$0xff] %vm393_vm0, %v4182_v4  ;;  %3654 = vmatprep.mubr.msk.f32.mxu0 %vm393_vm0, %v4351_v26  ;;  %v3322_v4 = vld [vmem:[%s4942_s1 + $0x40] sm:$0xff]  ;;  %v3924_v26 = vpack.c.bf16 %v3333_v25, %v3332_v24 }
  0x37   : > { %v3920_v23 = vpack.c.bf16 %v3323_v22, %v3322_v4 }
  0x39   : > { %3655 = vmatmul.mubr.msk.f32.vlgmr.msra.gmra.mrb[0].mxu0 %vm393_vm0, %v4383_v59 }
  0x3a   : > { %3915 = vmatpush3.bf16.msra.mxu0 %v3912_v54  ;;  %3657 = vmatprep.mubr.msk.f32.mxu0 %vm393_vm0, %v4385_v60 }
  0x3b   : > { %3917 = vmatprep.subr.bf16.mxu0 %v3916_v21 }
  0x3d   : > { %3658 = vmatmul.mubr.msk.f32.gmra.mrb[2].mxu0 %vm393_vm0, %v4392_v62 }
  0x3e   : > { %3660 = vmatprep.mubr.msk.f32.mxu0 %vm393_vm0, %v4394_v63 }
  0x41   : > { %3661 = vmatmul.mubr.msk.f32.gmra.mrb[4].mxu0 %vm393_vm0, %v4396_v0 }
  0x42   : > { %3663 = vmatprep.mubr.msk.f32.mxu0 %vm393_vm0, %v4422_v9 }
  0x45   : > { %3664 = vmatmul.mubr.msk.f32.gmra.mrb[6].mxu0 %vm393_vm0, %v4438_v10 }
  0x46   : > { %3670 = vmatprep.mubr.msk.f32.mxu0 %vm393_vm0, %v4353_v27  ;;  %v3342_v27 = vld [vmem:[%s4942_s1 + $0x60] sm:$0xff] }
  0x47   : > { %v3928_v29 = vpack.c.bf16 %v3343_v28, %v3342_v27 }
  0x49   : > { %3671 = vmatmul.mubr.msk.f32.vlgmr.msra.gmra.mrb[0].mxu0 %vm393_vm0, %v4398_v1 }
  0x4a   : > { %3919 = vmatpush3.bf16.msra.mxu0 %v3916_v21  ;;  %3673 = vmatprep.mubr.msk.f32.mxu0 %vm393_vm0, %v4400_v2 }
  0x4b   : > { %3921 = vmatprep.subr.bf16.mxu0 %v3920_v23 }
  0x4d   : > { %3674 = vmatmul.mubr.msk.f32.gmra.mrb[2].mxu0 %vm393_vm0, %v4402_v3 }
  0x4e   : > { %3676 = vmatprep.mubr.msk.f32.mxu0 %vm393_vm0, %v4404_v5 }
  0x51   : > { %3677 = vmatmul.mubr.msk.f32.gmra.mrb[4].mxu0 %vm393_vm0, %v4406_v6 }
  0x52   : > { %3679 = vmatprep.mubr.msk.f32.mxu0 %vm393_vm0, %v4440_v11 }
  0x55   : > { %3680 = vmatmul.mubr.msk.f32.gmra.mrb[6].mxu0 %vm393_vm0, %v4442_v12 }
  0x56   : > { %3686 = vmatprep.mubr.msk.f32.mxu0 %vm393_vm0, %v4383_v59 }
  0x59   : > { %3687 = vmatmul.mubr.msk.f32.vlgmr.msra.gmra.mrb[0].mxu0 %vm393_vm0, %v4385_v60 }
  0x5a   : > { %3923 = vmatpush3.bf16.msra.mxu0 %v3920_v23  ;;  %3689 = vmatprep.mubr.msk.f32.mxu0 %vm393_vm0, %v4392_v62 }
  0x5b   : > { %3925 = vmatprep.subr.bf16.mxu0 %v3924_v26 }
  0x5d   : > { %3690 = vmatmul.mubr.msk.f32.gmra.mrb[2].mxu0 %vm393_vm0, %v4394_v63 }
  0x5e   : > { %3692 = vmatprep.mubr.msk.f32.mxu0 %vm393_vm0, %v4396_v0 }
  0x61   : > { %3693 = vmatmul.mubr.msk.f32.gmra.mrb[4].mxu0 %vm393_vm0, %v4422_v9 }
  0x62   : > { %3695 = vmatprep.mubr.msk.f32.mxu0 %vm393_vm0, %v4438_v10 }
  0x65   : > { %3696 = vmatmul.mubr.msk.f32.gmra.mrb[6].mxu0 %vm393_vm0, %v4444_v13 }
  0x66   : > { %3702 = vmatprep.mubr.msk.f32.mxu0 %vm393_vm0, %v4373_v55 }
  0x69   : > { %3703 = vmatmul.mubr.msk.f32.vlgmr.msra.gmra.mrb[0].mxu0 %vm393_vm0, %v4375_v56 }
  0x6a   : > { %3927 = vmatpush3.bf16.msra.mxu0 %v3924_v26  ;;  %3705 = vmatprep.mubr.msk.f32.mxu0 %vm393_vm0, %v4379_v57 }
  0x6b   : > { %3929 = vmatprep.subr.bf16.mxu0 %v3928_v29 }
  0x6d   : > { %3706 = vmatmul.mubr.msk.f32.gmra.mrb[2].mxu0 %vm393_vm0, %v4381_v58 }
  0x6e   : > { %3708 = vmatprep.mubr.msk.f32.mxu0 %vm393_vm0, %v4390_v61 }
  0x71   : > { %3709 = vmatmul.mubr.msk.f32.gmra.mrb[4].mxu0 %vm393_vm0, %v4418_v7 }
  0x72   : > { %3711 = vmatprep.mubr.msk.f32.mxu0 %vm393_vm0, %v4420_v8 }
  0x75   : > { %3712 = vmatmul.mubr.msk.f32.gmra.mrb[6].mxu0 %vm393_vm0, %v4446_v14 }
  0x76   : > { %3718 = vmatprep.mubr.msk.f32.mxu0 %vm393_vm0, %v4398_v1 }
  0x79   : > { %3719 = vmatmul.mubr.msk.f32.vlgmr.msra.gmra.mrb[0].mxu0 %vm393_vm0, %v4400_v2 }
  0x7a   : > { %3931 = vmatpush3.bf16.msra.mxu0 %v3928_v29  ;;  %3721 = vmatprep.mubr.msk.f32.mxu0 %vm393_vm0, %v4402_v3 }
  0x7b   : > { %3933 = vmatprep.subr.bf16.mxu0 %v3932_v32 }
  0x7d   : > { %3722 = vmatmul.mubr.msk.f32.gmra.mrb[2].mxu0 %vm393_vm0, %v4404_v5 }
  0x7e   : > { %3724 = vmatprep.mubr.msk.f32.mxu0 %vm393_vm0, %v4406_v6 }
  0x81   : > { %3725 = vmatmul.mubr.msk.f32.gmra.mrb[4].mxu0 %vm393_vm0, %v4440_v11 }
  0x82   : > { %3727 = vmatprep.mubr.msk.f32.mxu0 %vm393_vm0, %v4442_v12 }
  0x85   : > { %3728 = vmatmul.mubr.msk.f32.gmra.mrb[6].mxu0 %vm393_vm0, %v4448_v15 }
  0x86   : > { %3734 = vmatprep.mubr.msk.f32.mxu0 %vm393_vm0, %v4385_v60 }
  0x89   : > { %3735 = vmatmul.mubr.msk.f32.vlgmr.msra.gmra.mrb[0].mxu0 %vm393_vm0, %v4392_v62 }
  0x8a   : > { %3935 = vmatpush3.bf16.msra.mxu0 %v3932_v32  ;;  %3737 = vmatprep.mubr.msk.f32.mxu0 %vm393_vm0, %v4394_v63 }
  0x8b   : > { %3937 = vmatprep.subr.bf16.mxu0 %v3936_v35 }
  0x8d   : > { %3738 = vmatmul.mubr.msk.f32.gmra.mrb[2].mxu0 %vm393_vm0, %v4396_v0 }
  0x8e   : > { %3740 = vmatprep.mubr.msk.f32.mxu0 %vm393_vm0, %v4422_v9 }
  0x91   : > { %3741 = vmatmul.mubr.msk.f32.gmra.mrb[4].mxu0 %vm393_vm0, %v4438_v10 }
  0x92   : > { %3743 = vmatprep.mubr.msk.f32.mxu0 %vm393_vm0, %v4444_v13 }
  0x95   : > { %3744 = vmatmul.mubr.msk.f32.gmra.mrb[6].mxu0 %vm393_vm0, %v4466_v16 }
  0x96   : > { %3750 = vmatprep.mubr.msk.f32.mxu0 %vm393_vm0, %v4375_v56 }
  0x99   : > { %3751 = vmatmul.mubr.msk.f32.vlgmr.msra.gmra.mrb[0].mxu0 %vm393_vm0, %v4379_v57 }
  0x9a   : > { %3939 = vmatpush3.bf16.msra.mxu0 %v3936_v35  ;;  %3753 = vmatprep.mubr.msk.f32.mxu0 %vm393_vm0, %v4381_v58 }
  0x9d   : > { %3754 = vmatmul.mubr.msk.f32.gmra.mrb[2].mxu0 %vm393_vm0, %v4390_v61 }
  0x9e   : > { %3756 = vmatprep.mubr.msk.f32.mxu0 %vm393_vm0, %v4418_v7 }
  0xa1   : > { %3757 = vmatmul.mubr.msk.f32.gmra.mrb[4].mxu0 %vm393_vm0, %v4420_v8 }
  0xa2   : > { %3759 = vmatprep.mubr.msk.f32.mxu0 %vm393_vm0, %v4446_v14 }
  0xa5   : > { %3760 = vmatmul.mubr.msk.f32.gmra.mrb[6].mxu0 %vm393_vm0, %v4468_v17 }
  0xa6   : > { %3766 = vmatprep.mubr.msk.f32.mxu0 %vm393_vm0, %v4400_v2 }
  0xa9   : > { %3767 = vmatmul.mubr.msk.f32.vlgmr.msra.gmra.mrb[0].mxu0 %vm393_vm0, %v4402_v3 }
  0xaa   : > { %3769 = vmatprep.mubr.msk.f32.mxu0 %vm393_vm0, %v4404_v5 }
  0xad   : > { %3770 = vmatmul.mubr.msk.f32.gmra.mrb[2].mxu0 %vm393_vm0, %v4406_v6 }
  0xae   : > { %3772 = vmatprep.mubr.msk.f32.mxu0 %vm393_vm0, %v4440_v11 }
  0xb1   : > { %3773 = vmatmul.mubr.msk.f32.gmra.mrb[4].mxu0 %vm393_vm0, %v4442_v12 }
  0xb2   : > { %3775 = vmatprep.mubr.msk.f32.mxu0 %vm393_vm0, %v4448_v15 }
  0xb5   : > { %3776 = vmatmul.mubr.msk.f32.gmra.mrb[6].mxu0 %vm393_vm0, %v4470_v18 }
 0x17c   : > { %v3768_v40 = vpop.f32.mrb[0].mxu0 }
 0x17d   : > { %v1748_v41 = vadd.f32 %v3768_v40, %v3372_v39  ;;  %v1693_v42 = vpop.f32.mrb[1].mxu0 }
 0x17e   : > { %v1747_v43 = vadd.f32 %v3372_v39, %v1693_v42 }
 0x17f   : > { %vm1756_vm11 = vcmp.ge.f32.partialorder %v1748_v41, 0.0  ;;  %v1764_v44 = vmul.f32 0.01, %v1748_v41 }
 0x180   : > { %vm1755_vm12 = vcmp.ge.f32.partialorder %v1747_v43, 0.0  ;;  %v1763_v46 = vmul.f32 0.01, %v1747_v43  ;;  %v3771_v47 = vpop.f32.mrb[2].mxu0 }
 0x181   : > { %v1772_v48 = vsel %vm1756_vm11, %v1748_v41, %v1764_v44  ;;  %v1750_v50 = vadd.f32 %v3771_v47, %v3372_v39  ;;  %v1703_v51 = vpop.f32.mrb[3].mxu0 }
 0x182   : > { %v1787_v52 = vmul.f32 %v4658_v45, %v1772_v48  ;;  %v1771_v53 = vsel %vm1755_vm12, %v1747_v43, %v1763_v46  ;;  %v1749_v54 = vadd.f32 %v3372_v39, %v1703_v51 }
 0x183   : > { %v1786_v55 = vmul.f32 %v4658_v45, %v1771_v53  ;;  %vm1758_vm13 = vcmp.ge.f32.partialorder %v1750_v50, 0.0  ;;  %v1766_v56 = vmul.f32 0.01, %v1750_v50 }
 0x184   : > { %v1802_v57 = vadd.f32 %v4663_v49, %v1787_v52  ;;  %vm1757_vm14 = vcmp.ge.f32.partialorder %v1749_v54, 0.0  ;;  %v1765_v58 = vmul.f32 0.01, %v1749_v54  ;;  %v3774_v59 = vpop.f32.mrb[4].mxu0  ;;  %v3402_v52 = vld [vmem:[%s4943_s2 + $0x18] sm:$0xff] }
 0x185   : > { %v1801_v60 = vadd.f32 %v4663_v49, %v1786_v55  ;;  %v1774_v61 = vsel %vm1758_vm13, %v1750_v50, %v1766_v56  ;;  %v1752_v62 = vadd.f32 %v3774_v59, %v3372_v39  ;;  %v1713_v63 = vpop.f32.mrb[5].mxu0  ;;  %v2015_v50 = vld [vmem:[#allocation2 + $0x1] sm:$0xff] }
 0x186   : > { %vm1810_vm15 = vcmp.ge.f32.partialorder %v1802_v57, 0.0  ;;  %v1818_v0 = vmul.f32 0.01, %v1802_v57  ;;  %v1789_v1 = vmul.f32 %v4658_v45, %v1774_v61  ;;  %v1773_v2 = vsel %vm1757_vm14, %v1749_v54, %v1765_v58  ;;  %v2162_v58 = vld [vmem:[#allocation2 + $0x2] sm:$0xff] }
 0x187   : > { %vm1809_vm0 = vcmp.ge.f32.partialorder %v1801_v60, 0.0  ;;  %v1817_v3 = vmul.f32 0.01, %v1801_v60  ;;  %v1788_v5 = vmul.f32 %v4658_v45, %v1773_v2  ;;  %vm1760_vm1 = vcmp.ge.f32.partialorder %v1752_v62, 0.0  ;;  %v3411_v61 = vld [vmem:[%s4943_s2 + $0x20] sm:$0xff] }
 0x188   : > { %v1826_v6 = vsel %vm1810_vm15, %v1802_v57, %v1818_v0  ;;  %v1804_v7 = vadd.f32 %v4663_v49, %v1789_v1  ;;  %v1768_v8 = vmul.f32 0.01, %v1752_v62  ;;  %v1751_v9 = vadd.f32 %v3372_v39, %v1713_v63  ;;  %v3777_v10 = vpop.f32.mrb[6].mxu0 }
 0x189   : > { %v1825_v11 = vsel %vm1809_vm0, %v1801_v60, %v1817_v3  ;;  %1855 = vst.msk [vmem:[#allocation2 + $0x21] sm:$0xff] %vm1853_vm10, %v1826_v6  ;;  %v1803_v12 = vadd.f32 %v4663_v49, %v1788_v5  ;;  %v1754_v13 = vadd.f32 %v3777_v10, %v3372_v39  ;;  %v1723_v14 = vpop.f32.mrb[7].mxu0  ;;  %v3420_v5 = vld [vmem:[%s4943_s2 + $0x28] sm:$0xff] }
 0x18a   : > { %1854 = vst.msk [vmem:[#allocation2 + $0x11] sm:$0xff] %vm1853_vm10, %v1825_v11  ;;  %vm1812_vm2 = vcmp.ge.f32.partialorder %v1804_v7, 0.0  ;;  %v1820_v15 = vmul.f32 0.01, %v1804_v7  ;;  %v1776_v16 = vsel %vm1760_vm1, %v1752_v62, %v1768_v8  ;;  %vm1759_vm3 = vcmp.ge.f32.partialorder %v1751_v9, 0.0  ;;  %v3447_v11 = vld [vmem:[%s4943_s2 + $0x40] sm:$0xff] }
 0x18b   : > { %vm1811_vm4 = vcmp.ge.f32.partialorder %v1803_v12, 0.0  ;;  %v1819_v17 = vmul.f32 0.01, %v1803_v12  ;;  %v1791_v18 = vmul.f32 %v4658_v45, %v1776_v16  ;;  %v1767_v19 = vmul.f32 0.01, %v1751_v9 }
 0x18c   : > { %v1828_v20 = vsel %vm1812_vm2, %v1804_v7, %v1820_v15  ;;  %vm1762_vm5 = vcmp.ge.f32.partialorder %v1754_v13, 0.0  ;;  %v1770_v21 = vmul.f32 0.01, %v1754_v13  ;;  %v1753_v4 = vadd.f32 %v3372_v39, %v1723_v14  ;;  %v3429_v7 = vld [vmem:[%s4943_s2 + $0x30] sm:$0xff]  ;;  %v3375_v15 = vld [vmem:[%s4949_s8] ss:$0 sm:$0xff] }
 0x18d   : > { %1857 = vst.msk [vmem:[#allocation2 + $0x41] sm:$0xff] %vm1853_vm10, %v1828_v20  ;;  %v1827_v22 = vsel %vm1811_vm4, %v1803_v12, %v1819_v17  ;;  %v1806_v23 = vadd.f32 %v4663_v49, %v1791_v18  ;;  %v1775_v24 = vsel %vm1759_vm3, %v1751_v9, %v1767_v19  ;;  %v3438_v9 = vld [vmem:[%s4943_s2 + $0x38] sm:$0xff]  ;;  %v2757_v12 = vld [vmem:[#allocation2 + $0x90] sm:$0xff] }
 0x18e   : > { %1856 = vst.msk [vmem:[#allocation2 + $0x31] sm:$0xff] %vm1853_vm10, %v1827_v22  ;;  %v1790_v25 = vmul.f32 %v4658_v45, %v1775_v24  ;;  %v1778_v26 = vsel %vm1762_vm5, %v1754_v13, %v1770_v21  ;;  %vm1761_vm6 = vcmp.ge.f32.partialorder %v1753_v4, 0.0  ;;  %v1769_v27 = vmul.f32 0.01, %v1753_v4  ;;  %v2904_v13 = vld [vmem:[#allocation2 + $0x91] sm:$0xff] }
 0x18f   : > { %vm1814_vm7 = vcmp.ge.f32.partialorder %v1806_v23, 0.0  ;;  %v1822_v28 = vmul.f32 0.01, %v1806_v23  ;;  %v1793_v29 = vmul.f32 %v4658_v45, %v1778_v26  ;;  %v3051_v14 = vld [vmem:[#allocation2 + $0x92] sm:$0xff] }
 0x190   : > { %v1805_v30 = vadd.f32 %v4663_v49, %v1790_v25  ;;  %v1777_v31 = vsel %vm1761_vm6, %v1753_v4, %v1769_v27  ;;  %v4692_v39 = vld [vmem:[#allocation2 + $0x20] sm:$0xff] }
 0x191   : > { %v1830_v32 = vsel %vm1814_vm7, %v1806_v23, %v1822_v28  ;;  %v1808_v33 = vadd.f32 %v4663_v49, %v1793_v29  ;;  %v1792_v34 = vmul.f32 %v4658_v45, %v1777_v31  ;;  %v4684_v35 = vld [vmem:[#allocation2 + $0x10] sm:$0xff]  ;;  %v4726_v53 = vld [vmem:[#allocation2 + $0x21] sm:$0xff] }
 0x192   : > { %1859 = vst.msk [vmem:[#allocation2 + $0x61] sm:$0xff] %vm1853_vm10, %v1830_v32  ;;  %vm1813_vm8 = vcmp.ge.f32.partialorder %v1805_v30, 0.0  ;;  %v1821_v37 = vmul.f32 0.01, %v1805_v30  ;;  %3781 = vmatmul.mubr.msk.f32.vlgmr.msra.gmra.mrb[0].mxu1 %vm1853_vm10, %v4684_v35  ;;  %v2016_v51 = vld [vmem:[#allocation2 + $0x11] sm:$0xff]  ;;  %v4755_v62 = vld [vmem:[#allocation2 + $0x22] sm:$0xff] }
 0x193   : > { %vm1816_vm9 = vcmp.ge.f32.partialorder %v1808_v33, 0.0  ;;  %v1824_v40 = vmul.f32 0.01, %v1808_v33  ;;  %v1807_v41 = vadd.f32 %v4663_v49, %v1792_v34  ;;  %3793 = vmatpush3.msra.mxu1 %v4649_v38  ;;  %3783 = vmatprep.mubr.msk.f32.mxu1 %vm1853_vm10, %v4692_v39  ;;  %v2163_v60 = vld [vmem:[#allocation2 + $0x12] sm:$0xff] }
 0x194   : > { %v1829_v42 = vsel %vm1813_vm8, %v1805_v30, %v1821_v37  ;;  %3806 = vmatprep.subr.mxu1 %v3393_v36  ;;  %v4704_v46 = vld [vmem:[#allocation2 + $0x40] sm:$0xff] }
 0x195   : > { %1858 = vst.msk [vmem:[#allocation2 + $0x51] sm:$0xff] %vm1853_vm10, %v1829_v42  ;;  %v1832_v43 = vsel %vm1816_vm9, %v1808_v33, %v1824_v40  ;;  %vm1815_vm11 = vcmp.ge.f32.partialorder %v1807_v41, 0.0  ;;  %v1823_v44 = vmul.f32 0.01, %v1807_v41  ;;  %v4699_v45 = vld [vmem:[#allocation2 + $0x30] sm:$0xff]  ;;  %v4734_v55 = vld [vmem:[#allocation2 + $0x41] sm:$0xff] }
 0x196   : > { %1861 = vst.msk [vmem:[#allocation2 + $0x81] sm:$0xff] %vm1853_vm10, %v1832_v43  ;;  %3784 = vmatmul.mubr.msk.f32.gmra.mrb[2].mxu1 %vm1853_vm10, %v4699_v45  ;;  %v4730_v54 = vld [vmem:[#allocation2 + $0x31] sm:$0xff]  ;;  %v4763_v0 = vld [vmem:[#allocation2 + $0x42] sm:$0xff] }
 0x197   : > { %v1831_v38 = vsel %vm1815_vm11, %v1807_v41, %v1823_v44  ;;  %3786 = vmatprep.mubr.msk.f32.mxu1 %vm1853_vm10, %v4704_v46  ;;  %v4759_v63 = vld [vmem:[#allocation2 + $0x32] sm:$0xff] }
 0x198   : > { %1860 = vst.msk [vmem:[#allocation2 + $0x71] sm:$0xff] %vm1853_vm10, %v1831_v38 }
 0x199   : > { %v4713_v48 = vld [vmem:[#allocation2 + $0x60] sm:$0xff] }
 0x19a   : > { %v4742_v57 = vld [vmem:[#allocation2 + $0x61] sm:$0xff] }
 0x19b   : > { %v4771_v2 = vld [vmem:[#allocation2 + $0x62] sm:$0xff] }
 0x19c   : > { %v4709_v47 = vld [vmem:[#allocation2 + $0x50] sm:$0xff] }
 0x19d   : > { %3787 = vmatmul.mubr.msk.f32.gmra.mrb[4].mxu1 %vm1853_vm10, %v4709_v47  ;;  %v4738_v56 = vld [vmem:[#allocation2 + $0x51] sm:$0xff]  ;;  %v2316_v6 = vld [vmem:[#allocation2 + $0x80] sm:$0xff] }
 0x19e   : > { %3789 = vmatprep.mubr.msk.f32.mxu1 %vm1853_vm10, %v4713_v48  ;;  %v4767_v1 = vld [vmem:[#allocation2 + $0x52] sm:$0xff]  ;;  %v2463_v8 = vld [vmem:[#allocation2 + $0x81] sm:$0xff] }
 0x19f   : > { %v4717_v49 = vld [vmem:[#allocation2 + $0x70] sm:$0xff]  ;;  %v2610_v10 = vld [vmem:[#allocation2 + $0x82] sm:$0xff] }
 0x1a0   : > { %v4746_v59 = vld [vmem:[#allocation2 + $0x71] sm:$0xff] }
 0x1a1   : > { %3790 = vmatmul.mubr.msk.f32.gmra.mrb[6].mxu1 %vm1853_vm10, %v4717_v49  ;;  %v4775_v3 = vld [vmem:[#allocation2 + $0x72] sm:$0xff] }
 0x1a2   : > { %3794 = vmatprep.mubr.msk.f32.mxu1 %vm1853_vm10, %v2015_v50 }
 0x1a5   : > { %3795 = vmatmul.mubr.msk.f32.vlgmr.msra.gmra.mrb[0].mxu1 %vm1853_vm10, %v2016_v51 }
 0x1a6   : > { %3807 = vmatpush3.msra.mxu1 %v3393_v36  ;;  %3797 = vmatprep.mubr.msk.f32.mxu1 %vm1853_vm10, %v4726_v53 }
 0x1a7   : > { %3820 = vmatprep.subr.mxu1 %v3402_v52 }
 0x1a9   : > { %3798 = vmatmul.mubr.msk.f32.gmra.mrb[2].mxu1 %vm1853_vm10, %v4730_v54 }
 0x1aa   : > { %3800 = vmatprep.mubr.msk.f32.mxu1 %vm1853_vm10, %v4734_v55 }
 0x1ad   : > { %3801 = vmatmul.mubr.msk.f32.gmra.mrb[4].mxu1 %vm1853_vm10, %v4738_v56 }
 0x1ae   : > { %3803 = vmatprep.mubr.msk.f32.mxu1 %vm1853_vm10, %v4742_v57 }
 0x1b1   : > { %3804 = vmatmul.mubr.msk.f32.gmra.mrb[6].mxu1 %vm1853_vm10, %v4746_v59 }
 0x1b2   : > { %3808 = vmatprep.mubr.msk.f32.mxu1 %vm1853_vm10, %v2162_v58 }
 0x1b5   : > { %3809 = vmatmul.mubr.msk.f32.vlgmr.msra.gmra.mrb[0].mxu1 %vm1853_vm10, %v2163_v60 }
 0x1b6   : > { %3821 = vmatpush3.msra.mxu1 %v3402_v52  ;;  %3811 = vmatprep.mubr.msk.f32.mxu1 %vm1853_vm10, %v4755_v62 }
 0x1b7   : > { %3834 = vmatprep.subr.mxu1 %v3411_v61 }
 0x1b9   : > { %3812 = vmatmul.mubr.msk.f32.gmra.mrb[2].mxu1 %vm1853_vm10, %v4759_v63 }
 0x1ba   : > { %3814 = vmatprep.mubr.msk.f32.mxu1 %vm1853_vm10, %v4763_v0 }
 0x1bd   : > { %3815 = vmatmul.mubr.msk.f32.gmra.mrb[4].mxu1 %vm1853_vm10, %v4767_v1 }
 0x1be   : > { %3817 = vmatprep.mubr.msk.f32.mxu1 %vm1853_vm10, %v4771_v2 }
 0x1c1   : > { %3818 = vmatmul.mubr.msk.f32.gmra.mrb[6].mxu1 %vm1853_vm10, %v4775_v3 }
 0x1c2   : > { %3822 = vmatprep.mubr.msk.f32.mxu1 %vm1853_vm10, %v4684_v35 }
 0x1c5   : > { %3823 = vmatmul.mubr.msk.f32.vlgmr.msra.gmra.mrb[0].mxu1 %vm1853_vm10, %v4692_v39 }
 0x1c6   : > { %3835 = vmatpush3.msra.mxu1 %v3411_v61  ;;  %3825 = vmatprep.mubr.msk.f32.mxu1 %vm1853_vm10, %v4699_v45 }
 0x1c7   : > { %3848 = vmatprep.subr.mxu1 %v3420_v5 }
 0x1c9   : > { %3826 = vmatmul.mubr.msk.f32.gmra.mrb[2].mxu1 %vm1853_vm10, %v4704_v46 }
 0x1ca   : > { %3828 = vmatprep.mubr.msk.f32.mxu1 %vm1853_vm10, %v4709_v47 }
 0x1cd   : > { %3829 = vmatmul.mubr.msk.f32.gmra.mrb[4].mxu1 %vm1853_vm10, %v4713_v48 }
 0x1ce   : > { %3831 = vmatprep.mubr.msk.f32.mxu1 %vm1853_vm10, %v4717_v49 }
 0x1d1   : > { %3832 = vmatmul.mubr.msk.f32.gmra.mrb[6].mxu1 %vm1853_vm10, %v2316_v6 }
 0x1d2   : > { %3836 = vmatprep.mubr.msk.f32.mxu1 %vm1853_vm10, %v2016_v51 }
 0x1d5   : > { %3837 = vmatmul.mubr.msk.f32.vlgmr.msra.gmra.mrb[0].mxu1 %vm1853_vm10, %v4726_v53 }
 0x1d6   : > { %3849 = vmatpush3.msra.mxu1 %v3420_v5  ;;  %3839 = vmatprep.mubr.msk.f32.mxu1 %vm1853_vm10, %v4730_v54 }
 0x1d7   : > { %3862 = vmatprep.subr.mxu1 %v3429_v7 }
 0x1d9   : > { %3840 = vmatmul.mubr.msk.f32.gmra.mrb[2].mxu1 %vm1853_vm10, %v4734_v55 }
 0x1da   : > { %3842 = vmatprep.mubr.msk.f32.mxu1 %vm1853_vm10, %v4738_v56 }
 0x1dd   : > { %3843 = vmatmul.mubr.msk.f32.gmra.mrb[4].mxu1 %vm1853_vm10, %v4742_v57 }
 0x1de   : > { %3845 = vmatprep.mubr.msk.f32.mxu1 %vm1853_vm10, %v4746_v59 }
 0x1e1   : > { %3846 = vmatmul.mubr.msk.f32.gmra.mrb[6].mxu1 %vm1853_vm10, %v2463_v8 }
 0x1e2   : > { %3850 = vmatprep.mubr.msk.f32.mxu1 %vm1853_vm10, %v2163_v60 }
 0x1e5   : > { %3851 = vmatmul.mubr.msk.f32.vlgmr.msra.gmra.mrb[0].mxu1 %vm1853_vm10, %v4755_v62 }
 0x1e6   : > { %3863 = vmatpush3.msra.mxu1 %v3429_v7  ;;  %3853 = vmatprep.mubr.msk.f32.mxu1 %vm1853_vm10, %v4759_v63 }
 0x1e7   : > { %3876 = vmatprep.subr.mxu1 %v3438_v9 }
 0x1e9   : > { %3854 = vmatmul.mubr.msk.f32.gmra.mrb[2].mxu1 %vm1853_vm10, %v4763_v0 }
 0x1ea   : > { %3856 = vmatprep.mubr.msk.f32.mxu1 %vm1853_vm10, %v4767_v1 }
 0x1ed   : > { %3857 = vmatmul.mubr.msk.f32.gmra.mrb[4].mxu1 %vm1853_vm10, %v4771_v2 }
 0x1ee   : > { %3859 = vmatprep.mubr.msk.f32.mxu1 %vm1853_vm10, %v4775_v3 }
 0x1f1   : > { %3860 = vmatmul.mubr.msk.f32.gmra.mrb[6].mxu1 %vm1853_vm10, %v2610_v10 }
 0x1f2   : > { %3864 = vmatprep.mubr.msk.f32.mxu1 %vm1853_vm10, %v4692_v39 }
 0x1f5   : > { %3865 = vmatmul.mubr.msk.f32.vlgmr.msra.gmra.mrb[0].mxu1 %vm1853_vm10, %v4699_v45 }
 0x1f6   : > { %3877 = vmatpush3.msra.mxu1 %v3438_v9  ;;  %3867 = vmatprep.mubr.msk.f32.mxu1 %vm1853_vm10, %v4704_v46 }
 0x1f7   : > { %3890 = vmatprep.subr.mxu1 %v3447_v11 }
 0x1f9   : > { %3868 = vmatmul.mubr.msk.f32.gmra.mrb[2].mxu1 %vm1853_vm10, %v4709_v47 }
 0x1fa   : > { %3870 = vmatprep.mubr.msk.f32.mxu1 %vm1853_vm10, %v4713_v48 }
 0x1fd   : > { %3871 = vmatmul.mubr.msk.f32.gmra.mrb[4].mxu1 %vm1853_vm10, %v4717_v49 }
 0x1fe   : > { %3873 = vmatprep.mubr.msk.f32.mxu1 %vm1853_vm10, %v2316_v6 }
 0x201   : > { %3874 = vmatmul.mubr.msk.f32.gmra.mrb[6].mxu1 %vm1853_vm10, %v2757_v12 }
 0x202   : > { %3878 = vmatprep.mubr.msk.f32.mxu1 %vm1853_vm10, %v4726_v53 }
 0x205   : > { %3879 = vmatmul.mubr.msk.f32.vlgmr.msra.gmra.mrb[0].mxu1 %vm1853_vm10, %v4730_v54 }
 0x206   : > { %3891 = vmatpush3.msra.mxu1 %v3447_v11  ;;  %3881 = vmatprep.mubr.msk.f32.mxu1 %vm1853_vm10, %v4734_v55 }
 0x209   : > { %3882 = vmatmul.mubr.msk.f32.gmra.mrb[2].mxu1 %vm1853_vm10, %v4738_v56 }
 0x20a   : > { %3884 = vmatprep.mubr.msk.f32.mxu1 %vm1853_vm10, %v4742_v57 }
 0x20d   : > { %3885 = vmatmul.mubr.msk.f32.gmra.mrb[4].mxu1 %vm1853_vm10, %v4746_v59 }
 0x20e   : > { %3887 = vmatprep.mubr.msk.f32.mxu1 %vm1853_vm10, %v2463_v8 }
 0x211   : > { %3888 = vmatmul.mubr.msk.f32.gmra.mrb[6].mxu1 %vm1853_vm10, %v2904_v13 }
 0x212   : > { %3892 = vmatprep.mubr.msk.f32.mxu1 %vm1853_vm10, %v4755_v62 }
 0x215   : > { %3893 = vmatmul.mubr.msk.f32.vlgmr.msra.gmra.mrb[0].mxu1 %vm1853_vm10, %v4759_v63 }
 0x216   : > { %3895 = vmatprep.mubr.msk.f32.mxu1 %vm1853_vm10, %v4763_v0 }
 0x219   : > { %3896 = vmatmul.mubr.msk.f32.gmra.mrb[2].mxu1 %vm1853_vm10, %v4767_v1 }
 0x21a   : > { %3898 = vmatprep.mubr.msk.f32.mxu1 %vm1853_vm10, %v4771_v2 }
 0x21d   : > { %3899 = vmatmul.mubr.msk.f32.gmra.mrb[4].mxu1 %vm1853_vm10, %v4775_v3 }
 0x21e   : > { %3901 = vmatprep.mubr.msk.f32.mxu1 %vm1853_vm10, %v2610_v10 }
 0x221   : > { %3902 = vmatmul.mubr.msk.f32.gmra.mrb[6].mxu1 %vm1853_vm10, %v3051_v14 }
 0x2e8   : > { %v3894_v16 = vpop.f32.mrb[0].mxu1 }
 0x2e9   : > { %v3940_v17 = vadd.f32 %v3894_v16, %v3375_v15  ;;  %v3144_v18 = vpop.f32.mrb[1].mxu1 }
 0x2ea   : > { %v3941_v19 = vadd.f32 %v3375_v15, %v3144_v18 }
 0x2eb   : > { %3192 = vst.msk [vmem:[%s325_s22 + $0x8] sm:$0xff] %vm1853_vm10, %v3940_v17 }
 0x2ec   : > { %3191 = vst.msk [vmem:[%s325_s22] sm:$0xff] %vm1853_vm10, %v3941_v19  ;;  %v3897_v20 = vpop.f32.mrb[2].mxu1 }
 0x2ed   : > { %v3942_v21 = vadd.f32 %v3897_v20, %v3375_v15  ;;  %v3154_v4 = vpop.f32.mrb[3].mxu1 }
 0x2ee   : > { %v3943_v22 = vadd.f32 %v3375_v15, %v3154_v4 }
 0x2ef   : > { %3194 = vst.msk [vmem:[%s325_s22 + $0x18] sm:$0xff] %vm1853_vm10, %v3942_v21 }
 0x2f0   : > { %3193 = vst.msk [vmem:[%s325_s22 + $0x10] sm:$0xff] %vm1853_vm10, %v3943_v22  ;;  %v3900_v23 = vpop.f32.mrb[4].mxu1 }
 0x2f1   : > { %v3944_v24 = vadd.f32 %v3900_v23, %v3375_v15  ;;  %v3164_v25 = vpop.f32.mrb[5].mxu1 }
 0x2f2   : > { %v3945_v26 = vadd.f32 %v3375_v15, %v3164_v25 }
 0x2f3   : > { %3196 = vst.msk [vmem:[%s325_s22 + $0x28] sm:$0xff] %vm1853_vm10, %v3944_v24 }
 0x2f4   : > { %3195 = vst.msk [vmem:[%s325_s22 + $0x20] sm:$0xff] %vm1853_vm10, %v3945_v26  ;;  %v3903_v27 = vpop.f32.mrb[6].mxu1 }
 0x2f5   : > { %v3946_v28 = vadd.f32 %v3903_v27, %v3375_v15  ;;  %v3174_v29 = vpop.f32.mrb[7].mxu1 }
 0x2f6   : > { %v3947_v30 = vadd.f32 %v3375_v15, %v3174_v29 }
 0x2f7   : > { %3198 = vst.msk [vmem:[%s325_s22 + $0x38] sm:$0xff] %vm1853_vm10, %v3946_v28 }
 0x2f8   : > { %3197 = vst.msk [vmem:[%s325_s22 + $0x30] sm:$0xff] %vm1853_vm10, %v3947_v30 }
 0x2f9   : > { %4131 = shalt.err (!%p4128_p3)
}
 0x2fa   : > { %s4132_s14 = scalar_lea.hbm %s4892_s27, 1024  ;;  %s4136_s23 = scalar_lea.hbm %s4950_s9, 2048 }
 0x2fb   : > { %p4133_p4 = scmp.ne.s32.totalorder %s4892_s27, %s4132_s14  ;;  %p4137_p9 = scmp.lt.u32.totalorder %s4892_s27, %s4950_s9 }
 0x2fc   : > { %p4138_p10 = scmp.lt.u32.totalorder %s4136_s23, %s4132_s14  ;;  %p4140_p12 = scmp.lt.u32.totalorder %s4132_s14, %s4892_s27 }
 0x2fd   : > { %p4134_p7 = pnand %p4133_p4, %p4274_p5 }
 0x2fe   : > { %p4139_p11 = por %p4138_p10, %p4137_p9 }
 0x2ff   : > { %p4135_p8 = pneg %p4134_p7 }
 0x300   : > { %p4141_p13 = por %p4140_p12, %p4139_p11 }
 0x302   : > { %p4142_p0 = pnand %p4141_p13, %p4135_p8 }
 0x304   : > { %4145 = shalt.err (!%p4142_p0)
}
 0x305   : > { %s4184_s28 = smov 128   ;;  %s4185_s29 = smov 8  }
 0x306   : > { %4076 = dma.vmem_to_hbm [thread:$0]  (%p4274_p5), %s4894_s24, 1024, %s4892_s27, %s4900_s13, %s4184_s28, %s4184_s28, %s4185_s29  }
 0x307 PF: > { %p4082_p1 = scmp.ge.s32.totalorder %s4180_s12, 2  ;;  %s3228_s16 = sand.u32 1, %s4168_s30  }
 0x308   : > { %s3229_s17 = scalar_lea.sflag [#allocation4], %s3228_s16 }
 0x309   : > { %p4079_p2 = pnand %p4082_p1, %p4278_p6 }
 0x30b   : > { %4163 = dma.done.wait (!%p4079_p2), %s3229_s17, 1024  }
 0x30c   : > { %4165 = vsyncadd (!%p4079_p2), %s3229_s17, 4294966272  ;;  %p19_p3 = scmp.ge.s32.totalorder %s4261_s15, 4   ;;  %s4953_s30 = smov %s4172_s10 }
 0x30d   : > { %s4954_s10 = smov %s4176_s11  ;;  %s4955_s11 = smov %s4272_s18 }
 0x30e   : > { %s4956_s12 = smov %s4261_s15  ;;  %21 = sbr.rel (!%p19_p3) target bundleno = 3 (0x3), region = 109 }
 0x315   :  { %3234 = vsyncpa [#allocation4], 1 }
 0x316   :  { %3236 = vsyncpa [#allocation4 + $0x1], 1 }

</bundles_post_ra>
